<compile_context>
chip_gen: v7x
topology: tpu7x:2x2x1
jax: 0.10.0
libtpu: 0.0.40
codegen_flags: <defaults>
</compile_context>

<pallas_src>
import functools

import jax
import jax.numpy as jnp
from jax.experimental import pallas as pl
from jax.experimental.pallas import tpu as pltpu

F32 = jnp.float32
BF16 = jnp.bfloat16
VMEM_LIMIT = 32 * 1024 * 1024


# ---------------------------------------------------------------------------
# small in-kernel helpers
# ---------------------------------------------------------------------------
def _dot(a, b):  # a @ b
    return jax.lax.dot_general(a, b, (((1,), (0,)), ((), ())),
                               preferred_element_type=F32)


def _dot_nt(a, b):  # a @ b.T
    return jax.lax.dot_general(a, b, (((1,), (1,)), ((), ())),
                               preferred_element_type=F32)


def _softmax_lastdim(a):
    m = jnp.max(a, axis=-1, keepdims=True)
    e = jnp.exp(a - m)
    # divide on the EUP instead of the VALU
    return e * pl.reciprocal(jnp.sum(e, axis=-1, keepdims=True), approx=True)


def _pick_hw_tile(hw, max_elems=4096):
    """Largest hw tile that is a multiple of 128, divides hw and is <= max_elems
    (falls back to the full hw, which is always a legal block)."""
    if hw <= max_elems or hw % 128 != 0:
        return hw
    t = (max_elems // 128) * 128
    while t >= 128:
        if hw % t == 0:
            return t
        t -= 128
    return hw


# ---------------------------------------------------------------------------
# Kernel A: fused-head spectral attention (one grid step per batch)
# ---------------------------------------------------------------------------
def _attn_kernel(xr_ref, xi_ref, t_ref, mb_ref, yr_ref, yi_ref):
    xr = xr_ref[0]                                    # (c, hwp) real of fft2(x)
    xi = xi_ref[0]                                    # (c, hwp) imag

    # complex L2 normalization along the (padded) spectral axis; zeros padded
    # columns contribute nothing, so this is exact.
    sumsq = jnp.sum(xr * xr + xi * xi, axis=-1, keepdims=True)
    inv = jax.lax.rsqrt(jnp.maximum(sumsq, 1e-24))
    qr = (xr * inv).astype(BF16)
    qi = (xi * inv).astype(BF16)

    # complex Gram (q @ k^T, no conjugation): 3 MXU matmuls, ai = S + S^T
    rr = _dot_nt(qr, qr)
    ii = _dot_nt(qi, qi)
    s = _dot_nt(qr, qi)
    ar = rr - ii
    ai = s + s.T

    t = t_ref[...]                                    # (c, 1) per-row temperature
    mb = mb_ref[...]                                  # (c, c) 0 / -1e30 head mask
    pr = _softmax_lastdim(ar * t + mb)                # block-diagonal softmax
    pi = _softmax_lastdim(ai * t + mb)

    prb = pr.astype(BF16)
    pib = pi.astype(BF16)
    vrb = xr.astype(BF16)
    vib = xi.astype(BF16)

    # out = attn @ v  (complex matmul); masked rows/cols are exactly zero
    yr_ref[0] = _dot(prb, vrb) - _dot(pib, vib)
    yi_ref[0] = _dot(prb, vib) + _dot(pib, vrb)


def spectral_attention(xr, xi, temp_rows, mask_bias):
    b, c, hwp = xr.shape
    blk = pl.BlockSpec((1, c, hwp), lambda i: (i, 0, 0))
    yr, yi = pl.pallas_call(
        _attn_kernel,
        grid=(b,),
        in_specs=[blk, blk,
                  pl.BlockSpec((c, 1), lambda i: (0, 0)),
                  pl.BlockSpec((c, c), lambda i: (0, 0))],
        out_specs=[blk, blk],
        out_shape=[jax.ShapeDtypeStruct((b, c, hwp), F32)] * 2,
        compiler_params=pltpu.CompilerParams(dimension_semantics=("parallel",)),
    )(xr, xi, temp_rows, mask_bias)
    return yr, yi


# ---------------------------------------------------------------------------
# Kernel B1: BN statistics pass (per-batch partial sum / sumsq of z = W1@x + b1)
# ---------------------------------------------------------------------------
def _bn_stats_kernel(x_ref, w1_ref, b1_ref, sum_ref, ssq_ref):
    z = _dot(w1_ref[...], x_ref[0]) + b1_ref[...]     # (d16, tile)
    s = jnp.sum(z, axis=-1, keepdims=True)            # (d16, 1)
    q = jnp.sum(z * z, axis=-1, keepdims=True)

    @pl.when(pl.program_id(1) == 0)
    def _():
        sum_ref[0] = s
        ssq_ref[0] = q

    @pl.when(pl.program_id(1) > 0)
    def _():
        sum_ref[0] = sum_ref[0] + s
        ssq_ref[0] = ssq_ref[0] + q


def bn_stats(xr, w1, b1, tile):
    b, c, hw = xr.shape
    d16 = w1.shape[0]
    nt = hw // tile
    x_spec = pl.BlockSpec((1, c, tile), lambda i, j: (i, 0, j))
    o_spec = pl.BlockSpec((1, d16, 1), lambda i, j: (i, 0, 0))
    return pl.pallas_call(
        _bn_stats_kernel,
        grid=(b, nt),
        in_specs=[x_spec,
                  pl.BlockSpec((d16, c), lambda i, j: (0, 0)),
                  pl.BlockSpec((d16, 1), lambda i, j: (0, 0))],
        out_specs=[o_spec, o_spec],
        out_shape=[jax.ShapeDtypeStruct((b, d16, 1), F32)] * 2,
        compiler_params=pltpu.CompilerParams(
            dimension_semantics=("parallel", "arbitrary"),
            vmem_limit_bytes=VMEM_LIMIT),
    )(xr, w1, b1)


# ---------------------------------------------------------------------------
# Kernel B2: apply BN / ReLU / W2 / sigmoid and gate fft2(x) (complex)
# ---------------------------------------------------------------------------
def _bn_apply_kernel(xr_ref, xi_ref, w1_ref, b1_ref, g_ref, be_ref,
                     w2_ref, b2_ref, sum_ref, ssq_ref, mr_ref, mi_ref, *, inv_n):
    xr = xr_ref[0]                                    # (c, tile)
    xi = xi_ref[0]

    z = _dot(w1_ref[...], xr) + b1_ref[...]           # (d16, tile)
    mean = sum_ref[...] * inv_n                       # (d16, 1) global stats
    var = ssq_ref[...] * inv_n - mean * mean
    scale = g_ref[...] * jax.lax.rsqrt(var + 1e-5)
    shift = be_ref[...] - mean * scale
    z = jnp.maximum(z * scale + shift, 0.0)           # BN (train stats) + ReLU

    z2 = _dot(w2_ref[...], z) + b2_ref[...]           # (c, tile)
    w_att = jax.nn.sigmoid(z2)

    mr_ref[0] = w_att * xr
    mi_ref[0] = w_att * xi


def weight_apply(xr, xi, sum_t, ssq_t, p, inv_n, tile):
    b, c, hw = xr.shape
    d16 = p["w1"].shape[0]
    nt = hw // tile
    x_spec = pl.BlockSpec((1, c, tile), lambda i, j: (i, 0, j))

    def cspec(shape):
        return pl.BlockSpec(shape, lambda i, j: (0,) * len(shape))

    kern = functools.partial(_bn_apply_kernel, inv_n=inv_n)
    mr, mi = pl.pallas_call(
        kern,
        grid=(b, nt),
        in_specs=[x_spec, x_spec,
                  cspec((d16, c)), cspec((d16, 1)), cspec((d16, 1)), cspec((d16, 1)),
                  cspec((c, d16)), cspec((c, 1)),
                  cspec((d16, 1)), cspec((d16, 1))],
        out_specs=[x_spec, x_spec],
        out_shape=[jax.ShapeDtypeStruct((b, c, hw), F32)] * 2,
        compiler_params=pltpu.CompilerParams(
            dimension_semantics=("parallel", "parallel"),
            vmem_limit_bytes=VMEM_LIMIT),
    )(xr, xi, p["w1"], p["b1"], p["gamma"], p["beta"], p["w2"], p["b2"],
      sum_t, ssq_t)
    return mr, mi


# ---------------------------------------------------------------------------
# Kernel C: project_out 1x1 conv on concat(out_f, out_lf), row-tiled & streaming
# ---------------------------------------------------------------------------
def _project_kernel(a_ref, b_ref, wa_ref, wb_ref, bias_ref, o_ref):
    o_ref[0] = (_dot(wa_ref[...], a_ref[0])
                + _dot(wb_ref[...], b_ref[0])
                + bias_ref[...])


def project_out(a, bb, p, tile):
    b, c, hw = a.shape
    nt = hw // tile
    x_spec = pl.BlockSpec((1, c, tile), lambda i, j: (i, 0, j))
    w_spec = pl.BlockSpec((c, c), lambda i, j: (0, 0))
    bias_spec = pl.BlockSpec((c, 1), lambda i, j: (0, 0))
    return pl.pallas_call(
        _project_kernel,
        grid=(b, nt),
        in_specs=[x_spec, x_spec, w_spec, w_spec, bias_spec],
        out_specs=x_spec,
        out_shape=jax.ShapeDtypeStruct((b, c, hw), F32),
        compiler_params=pltpu.CompilerParams(
            dimension_semantics=("parallel", "parallel"),
            vmem_limit_bytes=VMEM_LIMIT),
    )(a, bb, p["wp_a"], p["wp_b"], p["bp"])


# ---------------------------------------------------------------------------
# full forward (FFTs in JAX, everything else in Pallas kernels)
# ---------------------------------------------------------------------------
def attention_f_forward(x, params, num_heads):
    b, c, h, w = x.shape
    cph = c // num_heads
    hw = h * w

    # TODO(synk): fft2/ifft2 have no Pallas primitive -> jnp.fft glue.
    xf = jnp.fft.fft2(x.astype(F32))                  # complex64 over (h, w)
    xr = jnp.real(xf).reshape(b, c, hw)
    xi = jnp.imag(xf).reshape(b, c, hw)

    # ---- Kernel A: fused-head spectral attention (out_f) ----
    hwp = ((hw + 127) // 128) * 128                   # lane-dense spectral axis
    if hwp != hw:
        pad = ((0, 0), (0, 0), (0, hwp - hw))
        xr_p, xi_p = jnp.pad(xr, pad), jnp.pad(xi, pad)
    else:
        xr_p, xi_p = xr, xi
    temp_rows = jnp.repeat(
        params["temperature"].reshape(num_heads).astype(F32), cph).reshape(c, 1)
    head_id = jnp.arange(c, dtype=jnp.int32) // cph
    mask_bias = jnp.where(head_id[:, None] == head_id[None, :],
                          0.0, -1e30).astype(F32)     # block-diagonal attention
    yr, yi = spectral_attention(xr_p, xi_p, temp_rows, mask_bias)
    y = (yr[:, :, :hw] + 1j * yi[:, :, :hw]).reshape(b, num_heads, cph, hw)
    # torch.fft.ifft2 acts on the last two axes of the rearranged tensor: (cph, hw)
    out_f = jnp.abs(jnp.fft.ifft2(y)).reshape(b, c, hw).astype(F32)

    # ---- Kernel B: low-frequency gating branch (out_lf) ----
    tile = _pick_hw_tile(hw)
    ssum, ssq = bn_stats(xr, params["w1"], params["b1"], tile)
    sum_t = jnp.sum(ssum, axis=0)                     # (d16, 1) global BN sums
    ssq_t = jnp.sum(ssq, axis=0)
    inv_n = 1.0 / float(b * hw)
    mr, mi = weight_apply(xr, xi, sum_t, ssq_t, params, inv_n, tile)
    m = (mr + 1j * mi).reshape(b, c, h, w)
    out_lf = jnp.abs(jnp.fft.ifft2(m)).reshape(b, c, hw).astype(F32)

    # ---- Kernel C: project_out on concat(out_f, out_lf) ----
    o = project_out(out_f, out_lf, params, tile)
    return o.reshape(b, c, h, w)


# ---------------------------------------------------------------------------
# deterministic parameter init (shapes from Attention_F.__init__; weights are
# stored (out, in) for the channel-first kernels)
# ---------------------------------------------------------------------------
def init_params(key, dim, num_heads, bias=True):
    d16 = max(dim // 16, 1)
    ks = jax.random.split(key, 7)
    s1 = 1.0 / jnp.sqrt(dim)
    s2 = 1.0 / jnp.sqrt(d16)
    sp = 1.0 / jnp.sqrt(2 * dim)
    return {
        "temperature": jnp.ones((num_heads, 1, 1), F32),
        # self.weight: Conv2d(dim, dim//16, 1), BN(dim//16), ReLU,
        #              Conv2d(dim//16, dim, 1), Sigmoid
        "w1": jax.random.normal(ks[0], (d16, dim), F32) * s1,
        "b1": jax.random.normal(ks[1], (d16, 1), F32) * s1,
        "gamma": jnp.ones((d16, 1), F32),
        "beta": jnp.zeros((d16, 1), F32),
        "w2": jax.random.normal(ks[2], (dim, d16), F32) * s2,
        "b2": jax.random.normal(ks[3], (dim, 1), F32) * s2,
        # project_out: Conv2d(2*dim, dim, 1), stored as two (out, in) halves
        "wp_a": jax.random.normal(ks[4], (dim, dim), F32) * sp,
        "wp_b": jax.random.normal(ks[5], (dim, dim), F32) * sp,
        "bp": (jax.random.normal(ks[6], (dim, 1), F32) * sp) if bias
              else jnp.zeros((dim, 1), F32),
    }


# ---------------------------------------------------------------------------
# pure-JAX reference (same math, no Pallas) for a sanity check
# ---------------------------------------------------------------------------
def reference_forward(x, params, num_heads):
    b, c, h, w = x.shape
    cph = c // num_heads
    hw = h * w
    hi = jax.lax.Precision.HIGHEST
    xf = jnp.fft.fft2(x.astype(F32))
    qf = xf.reshape(b, num_heads, cph, hw)
    nrm = jnp.sqrt(jnp.sum(jnp.abs(qf) ** 2, axis=-1, keepdims=True))
    qn = qf / jnp.maximum(nrm, 1e-12)
    attn = jnp.einsum("bhcn,bhdn->bhcd", qn, qn, precision=hi)
    attn = attn * params["temperature"][None].astype(attn.dtype)
    attn = jax.nn.softmax(attn.real, axis=-1) + 1j * jax.nn.softmax(attn.imag, axis=-1)
    y = jnp.einsum("bhcd,bhdn->bhcn", attn, qf, precision=hi)
    out_f = jnp.abs(jnp.fft.ifft2(y)).reshape(b, c, h, w)

    def conv1x1(t, wmat, bvec):                       # wmat (out, in)
        return (jnp.einsum("oc,bchw->bohw", wmat, t, precision=hi)
                + bvec.reshape(1, -1, 1, 1))

    xr = xf.real
    z = conv1x1(xr, params["w1"], params["b1"])
    mu = jnp.mean(z, axis=(0, 2, 3), keepdims=True)
    var = jnp.mean((z - mu) ** 2, axis=(0, 2, 3), keepdims=True)
    z = (z - mu) / jnp.sqrt(var + 1e-5) * params["gamma"].reshape(1, -1, 1, 1) \
        + params["beta"].reshape(1, -1, 1, 1)
    z = jnp.maximum(z, 0.0)
    w_att = jax.nn.sigmoid(conv1x1(z, params["w2"], params["b2"]))
    out_lf = jnp.abs(jnp.fft.ifft2(w_att * xf))

    return (jnp.einsum("oc,bchw->bohw", params["wp_a"], out_f, precision=hi)
            + jnp.einsum("oc,bchw->bohw", params["wp_b"], out_lf, precision=hi)
            + params["bp"].reshape(1, -1, 1, 1))


if __name__ == "__main__":
    # dim divisible by num_heads and 16; hw = 256 (multiple of 128, lane-dense)
    B, DIM, NUM_HEADS, H, W = 2, 32, 4, 16, 16
    key = jax.random.PRNGKey(0)
    kx, kp = jax.random.split(key)
    x = jax.random.normal(kx, (B, DIM, H, W), F32)
    params = init_params(kp, DIM, NUM_HEADS, bias=True)

    fwd = jax.jit(functools.partial(attention_f_forward, num_heads=NUM_HEADS))
    out = jax.block_until_ready(fwd(x, params))

    assert out.shape == (B, DIM, H, W)
    assert bool(jnp.all(jnp.isfinite(out)))
    ref = reference_forward(x, params, NUM_HEADS)
    err = float(jnp.max(jnp.abs(out - ref)))
    assert bool(jnp.allclose(out, ref, rtol=5e-2, atol=5e-2)), f"max abs err {err}"
    print("KERNEL_OK")
</pallas_src>

<mosaic_0001>
module attributes {stable_mosaic.version = 11 : i64} {
  func.func @_attn_kernel(%arg0: i32, %arg1: memref<1x32x256xf32, #tpu.memory_space<vmem>>, %arg2: memref<1x32x256xf32, #tpu.memory_space<vmem>>, %arg3: memref<32x1xf32, #tpu.memory_space<vmem>>, %arg4: memref<32x32xf32, #tpu.memory_space<vmem>>, %arg5: memref<1x32x256xf32, #tpu.memory_space<vmem>>, %arg6: memref<1x32x256xf32, #tpu.memory_space<vmem>>) attributes {dimension_semantics = [#tpu.dimension_semantics<parallel>], iteration_bounds = array<i64: 2>, scalar_prefetch = 0 : i64, scratch_operands = 0 : i64, tpu.core_type = #tpu.core_type<tc>, window_params = [{transform_indices = @transform_0, window_bounds = array<i64: 1, 32, 256>}, {transform_indices = @transform_1, window_bounds = array<i64: 1, 32, 256>}, {pipeline_mode = #tpu.pipeline_mode<synchronous>, transform_indices = @transform_2, window_bounds = array<i64: 32, 1>}, {pipeline_mode = #tpu.pipeline_mode<synchronous>, transform_indices = @transform_3, window_bounds = array<i64: 32, 32>}, {transform_indices = @transform_4, window_bounds = array<i64: 1, 32, 256>}, {transform_indices = @transform_5, window_bounds = array<i64: 1, 32, 256>}]} {
    %c0 = arith.constant 0 : index
    %c0_0 = arith.constant 0 : index
    %c0_1 = arith.constant 0 : index
    %0 = vector.load %arg1[%c0, %c0_0, %c0_1] : memref<1x32x256xf32, #tpu.memory_space<vmem>>, vector<1x32x256xf32>
    %1 = vector.shape_cast %0 : vector<1x32x256xf32> to vector<32x256xf32>
    %c0_2 = arith.constant 0 : index
    %c0_3 = arith.constant 0 : index
    %c0_4 = arith.constant 0 : index
    %2 = vector.load %arg2[%c0_2, %c0_3, %c0_4] : memref<1x32x256xf32, #tpu.memory_space<vmem>>, vector<1x32x256xf32>
    %3 = vector.shape_cast %2 : vector<1x32x256xf32> to vector<32x256xf32>
    %4 = arith.mulf %1, %1 : vector<32x256xf32>
    %5 = arith.mulf %3, %3 : vector<32x256xf32>
    %6 = arith.addf %4, %5 : vector<32x256xf32>
    %cst = arith.constant dense<0.000000e+00> : vector<32xf32>
    %7 = vector.multi_reduction <add>, %6, %cst [1] : vector<32x256xf32> to vector<32xf32>
    %8 = vector.shape_cast %7 : vector<32xf32> to vector<32x1xf32>
    %cst_5 = arith.constant 1.000000e-24 : f32
    %9 = vector.broadcast %cst_5 : f32 to vector<32x1xf32>
    %10 = arith.maximumf %8, %9 : vector<32x1xf32>
    %11 = math.rsqrt %10 : vector<32x1xf32>
    %12 = vector.broadcast %11 : vector<32x1xf32> to vector<32x256xf32>
    %13 = arith.mulf %1, %12 : vector<32x256xf32>
    %14 = arith.truncf %13 : vector<32x256xf32> to vector<32x256xbf16>
    %15 = vector.broadcast %11 : vector<32x1xf32> to vector<32x256xf32>
    %16 = arith.mulf %3, %15 : vector<32x256xf32>
    %17 = arith.truncf %16 : vector<32x256xf32> to vector<32x256xbf16>
    %cst_6 = arith.constant dense<0.000000e+00> : vector<32x32xf32>
    %18 = tpu.matmul %14, %14, %cst_6 {dimension_numbers = #tpu.dot_dimension_numbers<[1], [1], [0], [0], [0, 0, 1, 0], [], []>} : vector<32x256xbf16>, vector<32x256xbf16>, vector<32x32xf32> -> vector<32x32xf32>
    %cst_7 = arith.constant dense<0.000000e+00> : vector<32x32xf32>
    %19 = tpu.matmul %17, %17, %cst_7 {dimension_numbers = #tpu.dot_dimension_numbers<[1], [1], [0], [0], [0, 0, 1, 0], [], []>} : vector<32x256xbf16>, vector<32x256xbf16>, vector<32x32xf32> -> vector<32x32xf32>
    %cst_8 = arith.constant dense<0.000000e+00> : vector<32x32xf32>
    %20 = tpu.matmul %14, %17, %cst_8 {dimension_numbers = #tpu.dot_dimension_numbers<[1], [1], [0], [0], [0, 0, 1, 0], [], []>} : vector<32x256xbf16>, vector<32x256xbf16>, vector<32x32xf32> -> vector<32x32xf32>
    %21 = arith.subf %18, %19 : vector<32x32xf32>
    %22 = tpu.transpose %20, [1, 0] : vector<32x32xf32> -> vector<32x32xf32>
    %23 = arith.addf %20, %22 : vector<32x32xf32>
    %c0_9 = arith.constant 0 : index
    %c0_10 = arith.constant 0 : index
    %24 = vector.load %arg3[%c0_9, %c0_10] : memref<32x1xf32, #tpu.memory_space<vmem>>, vector<32x1xf32>
    %c0_11 = arith.constant 0 : index
    %c0_12 = arith.constant 0 : index
    %25 = vector.load %arg4[%c0_11, %c0_12] : memref<32x32xf32, #tpu.memory_space<vmem>>, vector<32x32xf32>
    %26 = vector.broadcast %24 : vector<32x1xf32> to vector<32x32xf32>
    %27 = arith.mulf %21, %26 : vector<32x32xf32>
    %28 = arith.addf %27, %25 : vector<32x32xf32>
    %cst_13 = arith.constant dense<0xFF800000> : vector<32xf32>
    %29 = vector.multi_reduction <maximumf>, %28, %cst_13 [1] : vector<32x32xf32> to vector<32xf32>
    %30 = vector.shape_cast %29 : vector<32xf32> to vector<32x1xf32>
    %31 = vector.broadcast %30 : vector<32x1xf32> to vector<32x32xf32>
    %32 = arith.subf %28, %31 : vector<32x32xf32>
    %33 = math.exp %32 : vector<32x32xf32>
    %cst_14 = arith.constant dense<0.000000e+00> : vector<32xf32>
    %34 = vector.multi_reduction <add>, %33, %cst_14 [1] : vector<32x32xf32> to vector<32xf32>
    %35 = vector.shape_cast %34 : vector<32xf32> to vector<32x1xf32>
    %36 = tpu.reciprocal %35 {approx = true} : vector<32x1xf32> -> vector<32x1xf32>
    %37 = vector.broadcast %36 : vector<32x1xf32> to vector<32x32xf32>
    %38 = arith.mulf %33, %37 : vector<32x32xf32>
    %39 = vector.broadcast %24 : vector<32x1xf32> to vector<32x32xf32>
    %40 = arith.mulf %23, %39 : vector<32x32xf32>
    %41 = arith.addf %40, %25 : vector<32x32xf32>
    %cst_15 = arith.constant dense<0xFF800000> : vector<32xf32>
    %42 = vector.multi_reduction <maximumf>, %41, %cst_15 [1] : vector<32x32xf32> to vector<32xf32>
    %43 = vector.shape_cast %42 : vector<32xf32> to vector<32x1xf32>
    %44 = vector.broadcast %43 : vector<32x1xf32> to vector<32x32xf32>
    %45 = arith.subf %41, %44 : vector<32x32xf32>
    %46 = math.exp %45 : vector<32x32xf32>
    %cst_16 = arith.constant dense<0.000000e+00> : vector<32xf32>
    %47 = vector.multi_reduction <add>, %46, %cst_16 [1] : vector<32x32xf32> to vector<32xf32>
    %48 = vector.shape_cast %47 : vector<32xf32> to vector<32x1xf32>
    %49 = tpu.reciprocal %48 {approx = true} : vector<32x1xf32> -> vector<32x1xf32>
    %50 = vector.broadcast %49 : vector<32x1xf32> to vector<32x32xf32>
    %51 = arith.mulf %46, %50 : vector<32x32xf32>
    %52 = arith.truncf %38 : vector<32x32xf32> to vector<32x32xbf16>
    %53 = arith.truncf %51 : vector<32x32xf32> to vector<32x32xbf16>
    %54 = arith.truncf %1 : vector<32x256xf32> to vector<32x256xbf16>
    %55 = arith.truncf %3 : vector<32x256xf32> to vector<32x256xbf16>
    %cst_17 = arith.constant dense<0.000000e+00> : vector<32x256xf32>
    %56 = tpu.matmul %52, %54, %cst_17 {dimension_numbers = #tpu.dot_dimension_numbers<[1], [0], [0], [1], [0, 0, 1, 1], [], []>} : vector<32x32xbf16>, vector<32x256xbf16>, vector<32x256xf32> -> vector<32x256xf32>
    %cst_18 = arith.constant dense<0.000000e+00> : vector<32x256xf32>
    %57 = tpu.matmul %53, %55, %cst_18 {dimension_numbers = #tpu.dot_dimension_numbers<[1], [0], [0], [1], [0, 0, 1, 1], [], []>} : vector<32x32xbf16>, vector<32x256xbf16>, vector<32x256xf32> -> vector<32x256xf32>
    %58 = arith.subf %56, %57 : vector<32x256xf32>
    %c0_19 = arith.constant 0 : index
    %c0_20 = arith.constant 0 : index
    %c0_21 = arith.constant 0 : index
    %59 = vector.load %arg5[%c0_19, %c0_20, %c0_21] : memref<1x32x256xf32, #tpu.memory_space<vmem>>, vector<1x32x256xf32>
    %60 = vector.shape_cast %59 : vector<1x32x256xf32> to vector<32x256xf32>
    %61 = vector.shape_cast %58 : vector<32x256xf32> to vector<1x32x256xf32>
    tpu.vector_store %arg5[%c0_19, %c0_20, %c0_21], %61 {strides = array<i32>} : memref<1x32x256xf32, #tpu.memory_space<vmem>>, vector<1x32x256xf32>,
    %cst_22 = arith.constant dense<0.000000e+00> : vector<32x256xf32>
    %62 = tpu.matmul %52, %55, %cst_22 {dimension_numbers = #tpu.dot_dimension_numbers<[1], [0], [0], [1], [0, 0, 1, 1], [], []>} : vector<32x32xbf16>, vector<32x256xbf16>, vector<32x256xf32> -> vector<32x256xf32>
    %cst_23 = arith.constant dense<0.000000e+00> : vector<32x256xf32>
    %63 = tpu.matmul %53, %54, %cst_23 {dimension_numbers = #tpu.dot_dimension_numbers<[1], [0], [0], [1], [0, 0, 1, 1], [], []>} : vector<32x32xbf16>, vector<32x256xbf16>, vector<32x256xf32> -> vector<32x256xf32>
    %64 = arith.addf %62, %63 : vector<32x256xf32>
    %c0_24 = arith.constant 0 : index
    %c0_25 = arith.constant 0 : index
    %c0_26 = arith.constant 0 : index
    %65 = vector.load %arg6[%c0_24, %c0_25, %c0_26] : memref<1x32x256xf32, #tpu.memory_space<vmem>>, vector<1x32x256xf32>
    %66 = vector.shape_cast %65 : vector<1x32x256xf32> to vector<32x256xf32>
    %67 = vector.shape_cast %64 : vector<32x256xf32> to vector<1x32x256xf32>
    tpu.vector_store %arg6[%c0_24, %c0_25, %c0_26], %67 {strides = array<i32>} : memref<1x32x256xf32, #tpu.memory_space<vmem>>, vector<1x32x256xf32>,
    return
  }
  func.func @transform_0(%arg0: i32) -> (i32, i32, i32) {
    %c0_i32 = arith.constant 0 : i32
    %c0_i32_0 = arith.constant 0 : i32
    %c0_i32_1 = arith.constant 0 : i32
    return %arg0, %c0_i32, %c0_i32_0 : i32, i32, i32
  }
  func.func @transform_1(%arg0: i32) -> (i32, i32, i32) {
    %c0_i32 = arith.constant 0 : i32
    %c0_i32_0 = arith.constant 0 : i32
    %c0_i32_1 = arith.constant 0 : i32
    return %arg0, %c0_i32, %c0_i32_0 : i32, i32, i32
  }
  func.func @transform_2(%arg0: i32) -> (i32, i32) {
    %c0_i32 = arith.constant 0 : i32
    %c0_i32_0 = arith.constant 0 : i32
    %c0_i32_1 = arith.constant 0 : i32
    return %c0_i32, %c0_i32_0 : i32, i32
  }
  func.func @transform_3(%arg0: i32) -> (i32, i32) {
    %c0_i32 = arith.constant 0 : i32
    %c0_i32_0 = arith.constant 0 : i32
    %c0_i32_1 = arith.constant 0 : i32
    return %c0_i32, %c0_i32_0 : i32, i32
  }
  func.func @transform_4(%arg0: i32) -> (i32, i32, i32) {
    %c0_i32 = arith.constant 0 : i32
    %c0_i32_0 = arith.constant 0 : i32
    %c0_i32_1 = arith.constant 0 : i32
    return %arg0, %c0_i32, %c0_i32_0 : i32, i32, i32
  }
  func.func @transform_5(%arg0: i32) -> (i32, i32, i32) {
    %c0_i32 = arith.constant 0 : i32
    %c0_i32_0 = arith.constant 0 : i32
    %c0_i32_1 = arith.constant 0 : i32
    return %arg0, %c0_i32, %c0_i32_0 : i32, i32, i32
  }
}

module attributes {stable_mosaic.version = 11 : i64} {
  func.func @_bn_stats_kernel(%arg0: i32, %arg1: i32, %arg2: memref<1x32x256xf32, #tpu.memory_space<vmem>>, %arg3: memref<2x32xf32, #tpu.memory_space<vmem>>, %arg4: memref<2x1xf32, #tpu.memory_space<vmem>>, %arg5: memref<1x2x1xf32, #tpu.memory_space<vmem>>, %arg6: memref<1x2x1xf32, #tpu.memory_space<vmem>>) attributes {dimension_semantics = [#tpu.dimension_semantics<parallel>, #tpu.dimension_semantics<arbitrary>], iteration_bounds = array<i64: 2, 1>, scalar_prefetch = 0 : i64, scratch_operands = 0 : i64, tpu.core_type = #tpu.core_type<tc>, window_params = [{transform_indices = @transform_0, window_bounds = array<i64: 1, 32, 256>}, {pipeline_mode = #tpu.pipeline_mode<synchronous>, transform_indices = @transform_1, window_bounds = array<i64: 2, 32>}, {pipeline_mode = #tpu.pipeline_mode<synchronous>, transform_indices = @transform_2, window_bounds = array<i64: 2, 1>}, {transform_indices = @transform_3, window_bounds = array<i64: 1, 2, 1>}, {transform_indices = @transform_4, window_bounds = array<i64: 1, 2, 1>}]} {
    %c0 = arith.constant 0 : index
    %c0_0 = arith.constant 0 : index
    %0 = vector.load %arg3[%c0, %c0_0] : memref<2x32xf32, #tpu.memory_space<vmem>>, vector<2x32xf32>
    %c0_1 = arith.constant 0 : index
    %c0_2 = arith.constant 0 : index
    %c0_3 = arith.constant 0 : index
    %1 = vector.load %arg2[%c0_1, %c0_2, %c0_3] : memref<1x32x256xf32, #tpu.memory_space<vmem>>, vector<1x32x256xf32>
    %2 = vector.shape_cast %1 : vector<1x32x256xf32> to vector<32x256xf32>
    %cst = arith.constant dense<0.000000e+00> : vector<2x256xf32>
    %3 = tpu.matmul %0, %2, %cst {dimension_numbers = #tpu.dot_dimension_numbers<[1], [0], [0], [1], [0, 0, 1, 1], [], []>} : vector<2x32xf32>, vector<32x256xf32>, vector<2x256xf32> -> vector<2x256xf32>
    %c0_4 = arith.constant 0 : index
    %c0_5 = arith.constant 0 : index
    %4 = vector.load %arg4[%c0_4, %c0_5] : memref<2x1xf32, #tpu.memory_space<vmem>>, vector<2x1xf32>
    %5 = vector.broadcast %4 : vector<2x1xf32> to vector<2x256xf32>
    %6 = arith.addf %3, %5 : vector<2x256xf32>
    %cst_6 = arith.constant dense<0.000000e+00> : vector<2xf32>
    %7 = vector.multi_reduction <add>, %6, %cst_6 [1] : vector<2x256xf32> to vector<2xf32>
    %8 = vector.shape_cast %7 : vector<2xf32> to vector<2x1xf32>
    %9 = arith.mulf %6, %6 : vector<2x256xf32>
    %cst_7 = arith.constant dense<0.000000e+00> : vector<2xf32>
    %10 = vector.multi_reduction <add>, %9, %cst_7 [1] : vector<2x256xf32> to vector<2xf32>
    %11 = vector.shape_cast %10 : vector<2xf32> to vector<2x1xf32>
    %c0_i32 = arith.constant 0 : i32
    %12 = arith.cmpi eq, %arg1, %c0_i32 : i32
    %13 = arith.extui %12 : i1 to i32
    %c0_i32_8 = arith.constant 0 : i32
    %14 = arith.cmpi ne, %13, %c0_i32_8 : i32
    scf.if %14 {
      %c0_11 = arith.constant 0 : index
      %c0_12 = arith.constant 0 : index
      %c0_13 = arith.constant 0 : index
      %18 = vector.load %arg5[%c0_11, %c0_12, %c0_13] : memref<1x2x1xf32, #tpu.memory_space<vmem>>, vector<1x2x1xf32>
      %19 = vector.shape_cast %18 : vector<1x2x1xf32> to vector<2x1xf32>
      %20 = vector.shape_cast %8 : vector<2x1xf32> to vector<1x2x1xf32>
      tpu.vector_store %arg5[%c0_11, %c0_12, %c0_13], %20 {strides = array<i32>} : memref<1x2x1xf32, #tpu.memory_space<vmem>>, vector<1x2x1xf32>,
      %c0_14 = arith.constant 0 : index
      %c0_15 = arith.constant 0 : index
      %c0_16 = arith.constant 0 : index
      %21 = vector.load %arg6[%c0_14, %c0_15, %c0_16] : memref<1x2x1xf32, #tpu.memory_space<vmem>>, vector<1x2x1xf32>
      %22 = vector.shape_cast %21 : vector<1x2x1xf32> to vector<2x1xf32>
      %23 = vector.shape_cast %11 : vector<2x1xf32> to vector<1x2x1xf32>
      tpu.vector_store %arg6[%c0_14, %c0_15, %c0_16], %23 {strides = array<i32>} : memref<1x2x1xf32, #tpu.memory_space<vmem>>, vector<1x2x1xf32>,
    } else {
    }
    %c0_i32_9 = arith.constant 0 : i32
    %15 = arith.cmpi sgt, %arg1, %c0_i32_9 : i32
    %16 = arith.extui %15 : i1 to i32
    %c0_i32_10 = arith.constant 0 : i32
    %17 = arith.cmpi ne, %16, %c0_i32_10 : i32
    scf.if %17 {
      %c0_11 = arith.constant 0 : index
      %c0_12 = arith.constant 0 : index
      %c0_13 = arith.constant 0 : index
      %18 = vector.load %arg5[%c0_11, %c0_12, %c0_13] : memref<1x2x1xf32, #tpu.memory_space<vmem>>, vector<1x2x1xf32>
      %19 = vector.shape_cast %18 : vector<1x2x1xf32> to vector<2x1xf32>
      %20 = arith.addf %19, %8 : vector<2x1xf32>
      %c0_14 = arith.constant 0 : index
      %c0_15 = arith.constant 0 : index
      %c0_16 = arith.constant 0 : index
      %21 = vector.load %arg5[%c0_14, %c0_15, %c0_16] : memref<1x2x1xf32, #tpu.memory_space<vmem>>, vector<1x2x1xf32>
      %22 = vector.shape_cast %21 : vector<1x2x1xf32> to vector<2x1xf32>
      %23 = vector.shape_cast %20 : vector<2x1xf32> to vector<1x2x1xf32>
      tpu.vector_store %arg5[%c0_14, %c0_15, %c0_16], %23 {strides = array<i32>} : memref<1x2x1xf32, #tpu.memory_space<vmem>>, vector<1x2x1xf32>,
      %c0_17 = arith.constant 0 : index
      %c0_18 = arith.constant 0 : index
      %c0_19 = arith.constant 0 : index
      %24 = vector.load %arg6[%c0_17, %c0_18, %c0_19] : memref<1x2x1xf32, #tpu.memory_space<vmem>>, vector<1x2x1xf32>
      %25 = vector.shape_cast %24 : vector<1x2x1xf32> to vector<2x1xf32>
      %26 = arith.addf %25, %11 : vector<2x1xf32>
      %c0_20 = arith.constant 0 : index
      %c0_21 = arith.constant 0 : index
      %c0_22 = arith.constant 0 : index
      %27 = vector.load %arg6[%c0_20, %c0_21, %c0_22] : memref<1x2x1xf32, #tpu.memory_space<vmem>>, vector<1x2x1xf32>
      %28 = vector.shape_cast %27 : vector<1x2x1xf32> to vector<2x1xf32>
      %29 = vector.shape_cast %26 : vector<2x1xf32> to vector<1x2x1xf32>
      tpu.vector_store %arg6[%c0_20, %c0_21, %c0_22], %29 {strides = array<i32>} : memref<1x2x1xf32, #tpu.memory_space<vmem>>, vector<1x2x1xf32>,
    } else {
    }
    return
  }
  func.func @transform_0(%arg0: i32, %arg1: i32) -> (i32, i32, i32) {
    %c0_i32 = arith.constant 0 : i32
    %c0_i32_0 = arith.constant 0 : i32
    return %arg0, %c0_i32, %arg1 : i32, i32, i32
  }
  func.func @transform_1(%arg0: i32, %arg1: i32) -> (i32, i32) {
    %c0_i32 = arith.constant 0 : i32
    %c0_i32_0 = arith.constant 0 : i32
    %c0_i32_1 = arith.constant 0 : i32
    return %c0_i32, %c0_i32_0 : i32, i32
  }
  func.func @transform_2(%arg0: i32, %arg1: i32) -> (i32, i32) {
    %c0_i32 = arith.constant 0 : i32
    %c0_i32_0 = arith.constant 0 : i32
    %c0_i32_1 = arith.constant 0 : i32
    return %c0_i32, %c0_i32_0 : i32, i32
  }
  func.func @transform_3(%arg0: i32, %arg1: i32) -> (i32, i32, i32) {
    %c0_i32 = arith.constant 0 : i32
    %c0_i32_0 = arith.constant 0 : i32
    %c0_i32_1 = arith.constant 0 : i32
    return %arg0, %c0_i32, %c0_i32_0 : i32, i32, i32
  }
  func.func @transform_4(%arg0: i32, %arg1: i32) -> (i32, i32, i32) {
    %c0_i32 = arith.constant 0 : i32
    %c0_i32_0 = arith.constant 0 : i32
    %c0_i32_1 = arith.constant 0 : i32
    return %arg0, %c0_i32, %c0_i32_0 : i32, i32, i32
  }
}

module attributes {stable_mosaic.version = 11 : i64} {
  func.func @_bn_apply_kernel(%arg0: i32, %arg1: i32, %arg2: memref<1x32x256xf32, #tpu.memory_space<vmem>>, %arg3: memref<1x32x256xf32, #tpu.memory_space<vmem>>, %arg4: memref<2x32xf32, #tpu.memory_space<vmem>>, %arg5: memref<2x1xf32, #tpu.memory_space<vmem>>, %arg6: memref<2x1xf32, #tpu.memory_space<vmem>>, %arg7: memref<2x1xf32, #tpu.memory_space<vmem>>, %arg8: memref<32x2xf32, #tpu.memory_space<vmem>>, %arg9: memref<32x1xf32, #tpu.memory_space<vmem>>, %arg10: memref<2x1xf32, #tpu.memory_space<vmem>>, %arg11: memref<2x1xf32, #tpu.memory_space<vmem>>, %arg12: memref<1x32x256xf32, #tpu.memory_space<vmem>>, %arg13: memref<1x32x256xf32, #tpu.memory_space<vmem>>) attributes {dimension_semantics = [#tpu.dimension_semantics<parallel>, #tpu.dimension_semantics<parallel>], iteration_bounds = array<i64: 2, 1>, scalar_prefetch = 0 : i64, scratch_operands = 0 : i64, tpu.core_type = #tpu.core_type<tc>, window_params = [{transform_indices = @transform_0, window_bounds = array<i64: 1, 32, 256>}, {transform_indices = @transform_1, window_bounds = array<i64: 1, 32, 256>}, {pipeline_mode = #tpu.pipeline_mode<synchronous>, transform_indices = @transform_2, window_bounds = array<i64: 2, 32>}, {pipeline_mode = #tpu.pipeline_mode<synchronous>, transform_indices = @transform_3, window_bounds = array<i64: 2, 1>}, {pipeline_mode = #tpu.pipeline_mode<synchronous>, transform_indices = @transform_4, window_bounds = array<i64: 2, 1>}, {pipeline_mode = #tpu.pipeline_mode<synchronous>, transform_indices = @transform_5, window_bounds = array<i64: 2, 1>}, {pipeline_mode = #tpu.pipeline_mode<synchronous>, transform_indices = @transform_6, window_bounds = array<i64: 32, 2>}, {pipeline_mode = #tpu.pipeline_mode<synchronous>, transform_indices = @transform_7, window_bounds = array<i64: 32, 1>}, {pipeline_mode = #tpu.pipeline_mode<synchronous>, transform_indices = @transform_8, window_bounds = array<i64: 2, 1>}, {pipeline_mode = #tpu.pipeline_mode<synchronous>, transform_indices = @transform_9, window_bounds = array<i64: 2, 1>}, {transform_indices = @transform_10, window_bounds = array<i64: 1, 32, 256>}, {transform_indices = @transform_11, window_bounds = array<i64: 1, 32, 256>}]} {
    %c0 = arith.constant 0 : index
    %c0_0 = arith.constant 0 : index
    %c0_1 = arith.constant 0 : index
    %0 = vector.load %arg2[%c0, %c0_0, %c0_1] : memref<1x32x256xf32, #tpu.memory_space<vmem>>, vector<1x32x256xf32>
    %1 = vector.shape_cast %0 : vector<1x32x256xf32> to vector<32x256xf32>
    %c0_2 = arith.constant 0 : index
    %c0_3 = arith.constant 0 : index
    %c0_4 = arith.constant 0 : index
    %2 = vector.load %arg3[%c0_2, %c0_3, %c0_4] : memref<1x32x256xf32, #tpu.memory_space<vmem>>, vector<1x32x256xf32>
    %3 = vector.shape_cast %2 : vector<1x32x256xf32> to vector<32x256xf32>
    %c0_5 = arith.constant 0 : index
    %c0_6 = arith.constant 0 : index
    %4 = vector.load %arg4[%c0_5, %c0_6] : memref<2x32xf32, #tpu.memory_space<vmem>>, vector<2x32xf32>
    %cst = arith.constant dense<0.000000e+00> : vector<2x256xf32>
    %5 = tpu.matmul %4, %1, %cst {dimension_numbers = #tpu.dot_dimension_numbers<[1], [0], [0], [1], [0, 0, 1, 1], [], []>} : vector<2x32xf32>, vector<32x256xf32>, vector<2x256xf32> -> vector<2x256xf32>
    %c0_7 = arith.constant 0 : index
    %c0_8 = arith.constant 0 : index
    %6 = vector.load %arg5[%c0_7, %c0_8] : memref<2x1xf32, #tpu.memory_space<vmem>>, vector<2x1xf32>
    %7 = vector.broadcast %6 : vector<2x1xf32> to vector<2x256xf32>
    %8 = arith.addf %5, %7 : vector<2x256xf32>
    %c0_9 = arith.constant 0 : index
    %c0_10 = arith.constant 0 : index
    %9 = vector.load %arg10[%c0_9, %c0_10] : memref<2x1xf32, #tpu.memory_space<vmem>>, vector<2x1xf32>
    %cst_11 = arith.constant 0.001953125 : f32
    %10 = vector.broadcast %cst_11 : f32 to vector<2x1xf32>
    %11 = arith.mulf %9, %10 : vector<2x1xf32>
    %c0_12 = arith.constant 0 : index
    %c0_13 = arith.constant 0 : index
    %12 = vector.load %arg11[%c0_12, %c0_13] : memref<2x1xf32, #tpu.memory_space<vmem>>, vector<2x1xf32>
    %cst_14 = arith.constant 0.001953125 : f32
    %13 = vector.broadcast %cst_14 : f32 to vector<2x1xf32>
    %14 = arith.mulf %12, %13 : vector<2x1xf32>
    %15 = arith.mulf %11, %11 : vector<2x1xf32>
    %16 = arith.subf %14, %15 : vector<2x1xf32>
    %c0_15 = arith.constant 0 : index
    %c0_16 = arith.constant 0 : index
    %17 = vector.load %arg6[%c0_15, %c0_16] : memref<2x1xf32, #tpu.memory_space<vmem>>, vector<2x1xf32>
    %cst_17 = arith.constant 9.99999974E-6 : f32
    %18 = vector.broadcast %cst_17 : f32 to vector<2x1xf32>
    %19 = arith.addf %16, %18 : vector<2x1xf32>
    %20 = math.rsqrt %19 : vector<2x1xf32>
    %21 = arith.mulf %17, %20 : vector<2x1xf32>
    %c0_18 = arith.constant 0 : index
    %c0_19 = arith.constant 0 : index
    %22 = vector.load %arg7[%c0_18, %c0_19] : memref<2x1xf32, #tpu.memory_space<vmem>>, vector<2x1xf32>
    %23 = arith.mulf %11, %21 : vector<2x1xf32>
    %24 = arith.subf %22, %23 : vector<2x1xf32>
    %25 = vector.broadcast %21 : vector<2x1xf32> to vector<2x256xf32>
    %26 = arith.mulf %8, %25 : vector<2x256xf32>
    %27 = vector.broadcast %24 : vector<2x1xf32> to vector<2x256xf32>
    %28 = arith.addf %26, %27 : vector<2x256xf32>
    %cst_20 = arith.constant 0.000000e+00 : f32
    %29 = vector.broadcast %cst_20 : f32 to vector<2x256xf32>
    %30 = arith.maximumf %28, %29 : vector<2x256xf32>
    %c0_21 = arith.constant 0 : index
    %c0_22 = arith.constant 0 : index
    %31 = vector.load %arg8[%c0_21, %c0_22] : memref<32x2xf32, #tpu.memory_space<vmem>>, vector<32x2xf32>
    %cst_23 = arith.constant dense<0.000000e+00> : vector<32x256xf32>
    %32 = tpu.matmul %31, %30, %cst_23 {dimension_numbers = #tpu.dot_dimension_numbers<[1], [0], [0], [1], [0, 0, 1, 1], [], []>} : vector<32x2xf32>, vector<2x256xf32>, vector<32x256xf32> -> vector<32x256xf32>
    %c0_24 = arith.constant 0 : index
    %c0_25 = arith.constant 0 : index
    %33 = vector.load %arg9[%c0_24, %c0_25] : memref<32x1xf32, #tpu.memory_space<vmem>>, vector<32x1xf32>
    %34 = vector.broadcast %33 : vector<32x1xf32> to vector<32x256xf32>
    %35 = arith.addf %32, %34 : vector<32x256xf32>
    %36 = arith.negf %35 : vector<32x256xf32>
    %37 = math.exp %36 : vector<32x256xf32>
    %cst_26 = arith.constant 1.000000e+00 : f32
    %38 = vector.broadcast %cst_26 : f32 to vector<32x256xf32>
    %39 = arith.addf %38, %37 : vector<32x256xf32>
    %40 = arith.divf %38, %39 : vector<32x256xf32>
    %41 = arith.mulf %40, %1 : vector<32x256xf32>
    %c0_27 = arith.constant 0 : index
    %c0_28 = arith.constant 0 : index
    %c0_29 = arith.constant 0 : index
    %42 = vector.load %arg12[%c0_27, %c0_28, %c0_29] : memref<1x32x256xf32, #tpu.memory_space<vmem>>, vector<1x32x256xf32>
    %43 = vector.shape_cast %42 : vector<1x32x256xf32> to vector<32x256xf32>
    %44 = vector.shape_cast %41 : vector<32x256xf32> to vector<1x32x256xf32>
    tpu.vector_store %arg12[%c0_27, %c0_28, %c0_29], %44 {strides = array<i32>} : memref<1x32x256xf32, #tpu.memory_space<vmem>>, vector<1x32x256xf32>,
    %45 = arith.mulf %40, %3 : vector<32x256xf32>
    %c0_30 = arith.constant 0 : index
    %c0_31 = arith.constant 0 : index
    %c0_32 = arith.constant 0 : index
    %46 = vector.load %arg13[%c0_30, %c0_31, %c0_32] : memref<1x32x256xf32, #tpu.memory_space<vmem>>, vector<1x32x256xf32>
    %47 = vector.shape_cast %46 : vector<1x32x256xf32> to vector<32x256xf32>
    %48 = vector.shape_cast %45 : vector<32x256xf32> to vector<1x32x256xf32>
    tpu.vector_store %arg13[%c0_30, %c0_31, %c0_32], %48 {strides = array<i32>} : memref<1x32x256xf32, #tpu.memory_space<vmem>>, vector<1x32x256xf32>,
    return
  }
  func.func @transform_0(%arg0: i32, %arg1: i32) -> (i32, i32, i32) {
    %c0_i32 = arith.constant 0 : i32
    %c0_i32_0 = arith.constant 0 : i32
    return %arg0, %c0_i32, %arg1 : i32, i32, i32
  }
  func.func @transform_1(%arg0: i32, %arg1: i32) -> (i32, i32, i32) {
    %c0_i32 = arith.constant 0 : i32
    %c0_i32_0 = arith.constant 0 : i32
    return %arg0, %c0_i32, %arg1 : i32, i32, i32
  }
  func.func @transform_2(%arg0: i32, %arg1: i32) -> (i32, i32) {
    %c0_i32 = arith.constant 0 : i32
    %c0_i32_0 = arith.constant 0 : i32
    %c0_i32_1 = arith.constant 0 : i32
    return %c0_i32, %c0_i32_0 : i32, i32
  }
  func.func @transform_3(%arg0: i32, %arg1: i32) -> (i32, i32) {
    %c0_i32 = arith.constant 0 : i32
    %c0_i32_0 = arith.constant 0 : i32
    %c0_i32_1 = arith.constant 0 : i32
    return %c0_i32, %c0_i32_0 : i32, i32
  }
  func.func @transform_4(%arg0: i32, %arg1: i32) -> (i32, i32) {
    %c0_i32 = arith.constant 0 : i32
    %c0_i32_0 = arith.constant 0 : i32
    %c0_i32_1 = arith.constant 0 : i32
    return %c0_i32, %c0_i32_0 : i32, i32
  }
  func.func @transform_5(%arg0: i32, %arg1: i32) -> (i32, i32) {
    %c0_i32 = arith.constant 0 : i32
    %c0_i32_0 = arith.constant 0 : i32
    %c0_i32_1 = arith.constant 0 : i32
    return %c0_i32, %c0_i32_0 : i32, i32
  }
  func.func @transform_6(%arg0: i32, %arg1: i32) -> (i32, i32) {
    %c0_i32 = arith.constant 0 : i32
    %c0_i32_0 = arith.constant 0 : i32
    %c0_i32_1 = arith.constant 0 : i32
    return %c0_i32, %c0_i32_0 : i32, i32
  }
  func.func @transform_7(%arg0: i32, %arg1: i32) -> (i32, i32) {
    %c0_i32 = arith.constant 0 : i32
    %c0_i32_0 = arith.constant 0 : i32
    %c0_i32_1 = arith.constant 0 : i32
    return %c0_i32, %c0_i32_0 : i32, i32
  }
  func.func @transform_8(%arg0: i32, %arg1: i32) -> (i32, i32) {
    %c0_i32 = arith.constant 0 : i32
    %c0_i32_0 = arith.constant 0 : i32
    %c0_i32_1 = arith.constant 0 : i32
    return %c0_i32, %c0_i32_0 : i32, i32
  }
  func.func @transform_9(%arg0: i32, %arg1: i32) -> (i32, i32) {
    %c0_i32 = arith.constant 0 : i32
    %c0_i32_0 = arith.constant 0 : i32
    %c0_i32_1 = arith.constant 0 : i32
    return %c0_i32, %c0_i32_0 : i32, i32
  }
  func.func @transform_10(%arg0: i32, %arg1: i32) -> (i32, i32, i32) {
    %c0_i32 = arith.constant 0 : i32
    %c0_i32_0 = arith.constant 0 : i32
    return %arg0, %c0_i32, %arg1 : i32, i32, i32
  }
  func.func @transform_11(%arg0: i32, %arg1: i32) -> (i32, i32, i32) {
    %c0_i32 = arith.constant 0 : i32
    %c0_i32_0 = arith.constant 0 : i32
    return %arg0, %c0_i32, %arg1 : i32, i32, i32
  }
}

module attributes {stable_mosaic.version = 11 : i64} {
  func.func @_project_kernel(%arg0: i32, %arg1: i32, %arg2: memref<1x32x256xf32, #tpu.memory_space<vmem>>, %arg3: memref<1x32x256xf32, #tpu.memory_space<vmem>>, %arg4: memref<32x32xf32, #tpu.memory_space<vmem>>, %arg5: memref<32x32xf32, #tpu.memory_space<vmem>>, %arg6: memref<32x1xf32, #tpu.memory_space<vmem>>, %arg7: memref<1x32x256xf32, #tpu.memory_space<vmem>>) attributes {dimension_semantics = [#tpu.dimension_semantics<parallel>, #tpu.dimension_semantics<parallel>], iteration_bounds = array<i64: 2, 1>, scalar_prefetch = 0 : i64, scratch_operands = 0 : i64, tpu.core_type = #tpu.core_type<tc>, window_params = [{transform_indices = @transform_0, window_bounds = array<i64: 1, 32, 256>}, {transform_indices = @transform_1, window_bounds = array<i64: 1, 32, 256>}, {pipeline_mode = #tpu.pipeline_mode<synchronous>, transform_indices = @transform_2, window_bounds = array<i64: 32, 32>}, {pipeline_mode = #tpu.pipeline_mode<synchronous>, transform_indices = @transform_3, window_bounds = array<i64: 32, 32>}, {pipeline_mode = #tpu.pipeline_mode<synchronous>, transform_indices = @transform_4, window_bounds = array<i64: 32, 1>}, {transform_indices = @transform_5, window_bounds = array<i64: 1, 32, 256>}]} {
    %c0 = arith.constant 0 : index
    %c0_0 = arith.constant 0 : index
    %0 = vector.load %arg4[%c0, %c0_0] : memref<32x32xf32, #tpu.memory_space<vmem>>, vector<32x32xf32>
    %c0_1 = arith.constant 0 : index
    %c0_2 = arith.constant 0 : index
    %c0_3 = arith.constant 0 : index
    %1 = vector.load %arg2[%c0_1, %c0_2, %c0_3] : memref<1x32x256xf32, #tpu.memory_space<vmem>>, vector<1x32x256xf32>
    %2 = vector.shape_cast %1 : vector<1x32x256xf32> to vector<32x256xf32>
    %cst = arith.constant dense<0.000000e+00> : vector<32x256xf32>
    %3 = tpu.matmul %0, %2, %cst {dimension_numbers = #tpu.dot_dimension_numbers<[1], [0], [0], [1], [0, 0, 1, 1], [], []>} : vector<32x32xf32>, vector<32x256xf32>, vector<32x256xf32> -> vector<32x256xf32>
    %c0_4 = arith.constant 0 : index
    %c0_5 = arith.constant 0 : index
    %4 = vector.load %arg5[%c0_4, %c0_5] : memref<32x32xf32, #tpu.memory_space<vmem>>, vector<32x32xf32>
    %c0_6 = arith.constant 0 : index
    %c0_7 = arith.constant 0 : index
    %c0_8 = arith.constant 0 : index
    %5 = vector.load %arg3[%c0_6, %c0_7, %c0_8] : memref<1x32x256xf32, #tpu.memory_space<vmem>>, vector<1x32x256xf32>
    %6 = vector.shape_cast %5 : vector<1x32x256xf32> to vector<32x256xf32>
    %cst_9 = arith.constant dense<0.000000e+00> : vector<32x256xf32>
    %7 = tpu.matmul %4, %6, %cst_9 {dimension_numbers = #tpu.dot_dimension_numbers<[1], [0], [0], [1], [0, 0, 1, 1], [], []>} : vector<32x32xf32>, vector<32x256xf32>, vector<32x256xf32> -> vector<32x256xf32>
    %8 = arith.addf %3, %7 : vector<32x256xf32>
    %c0_10 = arith.constant 0 : index
    %c0_11 = arith.constant 0 : index
    %9 = vector.load %arg6[%c0_10, %c0_11] : memref<32x1xf32, #tpu.memory_space<vmem>>, vector<32x1xf32>
    %10 = vector.broadcast %9 : vector<32x1xf32> to vector<32x256xf32>
    %11 = arith.addf %8, %10 : vector<32x256xf32>
    %c0_12 = arith.constant 0 : index
    %c0_13 = arith.constant 0 : index
    %c0_14 = arith.constant 0 : index
    %12 = vector.load %arg7[%c0_12, %c0_13, %c0_14] : memref<1x32x256xf32, #tpu.memory_space<vmem>>, vector<1x32x256xf32>
    %13 = vector.shape_cast %12 : vector<1x32x256xf32> to vector<32x256xf32>
    %14 = vector.shape_cast %11 : vector<32x256xf32> to vector<1x32x256xf32>
    tpu.vector_store %arg7[%c0_12, %c0_13, %c0_14], %14 {strides = array<i32>} : memref<1x32x256xf32, #tpu.memory_space<vmem>>, vector<1x32x256xf32>,
    return
  }
  func.func @transform_0(%arg0: i32, %arg1: i32) -> (i32, i32, i32) {
    %c0_i32 = arith.constant 0 : i32
    %c0_i32_0 = arith.constant 0 : i32
    return %arg0, %c0_i32, %arg1 : i32, i32, i32
  }
  func.func @transform_1(%arg0: i32, %arg1: i32) -> (i32, i32, i32) {
    %c0_i32 = arith.constant 0 : i32
    %c0_i32_0 = arith.constant 0 : i32
    return %arg0, %c0_i32, %arg1 : i32, i32, i32
  }
  func.func @transform_2(%arg0: i32, %arg1: i32) -> (i32, i32) {
    %c0_i32 = arith.constant 0 : i32
    %c0_i32_0 = arith.constant 0 : i32
    %c0_i32_1 = arith.constant 0 : i32
    return %c0_i32, %c0_i32_0 : i32, i32
  }
  func.func @transform_3(%arg0: i32, %arg1: i32) -> (i32, i32) {
    %c0_i32 = arith.constant 0 : i32
    %c0_i32_0 = arith.constant 0 : i32
    %c0_i32_1 = arith.constant 0 : i32
    return %c0_i32, %c0_i32_0 : i32, i32
  }
  func.func @transform_4(%arg0: i32, %arg1: i32) -> (i32, i32) {
    %c0_i32 = arith.constant 0 : i32
    %c0_i32_0 = arith.constant 0 : i32
    %c0_i32_1 = arith.constant 0 : i32
    return %c0_i32, %c0_i32_0 : i32, i32
  }
  func.func @transform_5(%arg0: i32, %arg1: i32) -> (i32, i32, i32) {
    %c0_i32 = arith.constant 0 : i32
    %c0_i32_0 = arith.constant 0 : i32
    return %arg0, %c0_i32, %arg1 : i32, i32, i32
  }
}

</mosaic_0001>

<bundles_post_ra>
// kernel: attention_f_forward.4
= control target key start
LH: loop header
LB: loop body
LE: loop exit
PB: predicated region body
PF: predicated region fallthrough
CT: control target
= control target key end

     0   :  { %s1153_s18 = smov 0   ;;  %s1382_s0 = inlined_call_operand.vmem [shape: f32[2,32,256], index: 0, kind: input, shape index: {}]   ;;  %s1383_s1 = inlined_call_operand.vmem [shape: f32[2,32,256], index: 1, kind: input, shape index: {}]   ;;  %s1384_s2 = inlined_call_operand.vmem [shape: f32[32,1], index: 2, kind: input, shape index: {}]   ;;  %s1385_s3 = inlined_call_operand.vmem [shape: f32[32,32], index: 3, kind: input, shape index: {}]   ;;  %s1386_s4 = inlined_call_operand.vmem [shape: f32[2,32,256], index: 4, kind: output, shape index: {0}]   ;;  %s1387_s5 = inlined_call_operand.vmem [shape: f32[2,32,256], index: 5, kind: output, shape index: {1}]  }
   0x1 LB: > { %s1023_s19 = sadd.s32 4294967295, %s1120_s18   ;;  %p1027_p0 = scmp.ge.s32.totalorder %s1120_s18, 1  ;;  %s1120_s18 = sphi %s1153_s18, %s16_s18  }
   0x2   : > { %p200_p1 = scmp.lt.s32.totalorder %s1120_s18, 3 }
   0x4   : > { %p201_p2 = pnand %p1027_p0, %p200_p1 }
   0x5   : > { %p238_p3 = scmp.lt.s32.totalorder (!%p201_p2), %s1023_s19, 1  ;;  %v533_v44 = vld [vmem:[%s1384_s2 + $0x18] sm:$0xff] (!%p201_p2)  ;;  %v1122_v45 = vmov (!%p201_p2), 0   ;;  %v532_v46 = vld [vmem:[%s1384_s2 + $0x10] sm:$0xff] (!%p201_p2)  ;;  %v530_v47 = vld [vmem:[%s1384_s2] sm:$0xff] (!%p201_p2)  ;;  %vm566_vm0 = vcmask (!%p201_p2), 261120  }
   0x6   : > { %204 = sbr.rel (%p201_p2) target bundleno = 1129 (0x469), region = 36  ;;  %1073 = vset.pattern.permute.xlu1 (!%p201_p2), %v1122_v45  ;;  %1072 = vset.pattern.permute.xlu0 (!%p201_p2), %v1122_v45  ;;  %v531_v48 = vld [vmem:[%s1384_s2 + $0x8] sm:$0xff] (!%p201_p2) }
   0xd   : > { %s1389_s19 = smov (!%p238_p3, %s1023_s19), 1 }
   0xe   : > { %s1161_s20 = sshll.u32 %s1389_s19, 6 }
   0xf   : > { %s242_s23 = scalar_lea.vmem %s1382_s0, %s1161_s20  ;;  %s1171_s26 = scalar_lea.vmem %s1383_s1, %s1161_s20 }
  0x10   : > { %v1173_v0 = vld [vmem:[%s242_s23] sm:$0xff]  ;;  %v1175_v1 = vld [vmem:[%s242_s23 + $0x8] sm:$0xff]  ;;  %v1205_v14 = vld [vmem:[%s242_s23 + $0x10] sm:$0xff]  ;;  %s1355_s22 = scalar_lea.vmem %s1386_s4, %s1161_s20  ;;  %s1362_s25 = scalar_lea.vmem %s1387_s5, %s1161_s20 }
  0x11   : > { %v1178_v2 = vld [vmem:[%s1171_s26] sm:$0xff]  ;;  %v1181_v3 = vld [vmem:[%s1171_s26 + $0x8] sm:$0xff]  ;;  %v275_v4 = vmul.f32 %v1173_v0, %v1173_v0  ;;  %v276_v5 = vmul.f32 %v1175_v1, %v1175_v1  ;;  %v1211_v18 = vld [vmem:[%s242_s23 + $0x18] sm:$0xff]  ;;  %v277_v21 = vmul.f32 %v1205_v14, %v1205_v14 }
  0x12   : > { %v283_v6 = vmul.f32 %v1178_v2, %v1178_v2  ;;  %v1189_v7 = vld [vmem:[%s242_s23 + $0x20] sm:$0xff]  ;;  %v1191_v8 = vld [vmem:[%s242_s23 + $0x28] sm:$0xff]  ;;  %v284_v9 = vmul.f32 %v1181_v3, %v1181_v3  ;;  %v1214_v19 = vld [vmem:[%s1171_s26 + $0x10] sm:$0xff]  ;;  %v278_v23 = vmul.f32 %v1211_v18, %v1211_v18 }
  0x13   : > { %v1196_v10 = vld [vmem:[%s1171_s26 + $0x20] sm:$0xff]  ;;  %v1199_v11 = vld [vmem:[%s1171_s26 + $0x28] sm:$0xff]  ;;  %v279_v12 = vmul.f32 %v1189_v7, %v1189_v7  ;;  %v280_v13 = vmul.f32 %v1191_v8, %v1191_v8  ;;  %v1217_v20 = vld [vmem:[%s1171_s26 + $0x18] sm:$0xff]  ;;  %v285_v24 = vmul.f32 %v1214_v19, %v1214_v19 }
  0x14   : > { %v291_v15 = vadd.f32 %v283_v6, %v275_v4  ;;  %v287_v16 = vmul.f32 %v1196_v10, %v1196_v10  ;;  %v288_v17 = vmul.f32 %v1199_v11, %v1199_v11  ;;  %v292_v22 = vadd.f32 %v284_v9, %v276_v5  ;;  %v1227_v26 = vld [vmem:[%s242_s23 + $0x30] sm:$0xff]  ;;  %v1229_v27 = vld [vmem:[%s242_s23 + $0x38] sm:$0xff] }
  0x15   : > { %v286_v25 = vmul.f32 %v1217_v20, %v1217_v20  ;;  %v1232_v28 = vld [vmem:[%s1171_s26 + $0x30] sm:$0xff]  ;;  %v1235_v31 = vld [vmem:[%s1171_s26 + $0x38] sm:$0xff]  ;;  %v281_v32 = vmul.f32 %v1227_v26, %v1227_v26  ;;  %v282_v33 = vmul.f32 %v1229_v27, %v1229_v27  ;;  %v293_v35 = vadd.f32 %v285_v24, %v277_v21 }
  0x16   : > { %v295_v29 = vadd.f32 %v287_v16, %v279_v12  ;;  %v296_v30 = vadd.f32 %v288_v17, %v280_v13  ;;  %v299_v34 = vadd.f32 %v292_v22, %v291_v15  ;;  %v289_v37 = vmul.f32 %v1232_v28, %v1232_v28 }
  0x17   : > { %v294_v36 = vadd.f32 %v286_v25, %v278_v23  ;;  %v290_v39 = vmul.f32 %v1235_v31, %v1235_v31 }
  0x18   : > { %v305_v38 = vadd.f32 %v296_v30, %v295_v29  ;;  %300 = vadd.xlane.f32.xlu0 %v299_v34  ;;  %v297_v41 = vadd.f32 %v289_v37, %v281_v32 }
  0x19   : > { %v302_v40 = vadd.f32 %v294_v36, %v293_v35  ;;  %v298_v42 = vadd.f32 %v290_v39, %v282_v33 }
  0x1a   : > { %306 = vadd.xlane.f32.xlu1 %v305_v38 }
  0x1b   : > { %v308_v43 = vadd.f32 %v298_v42, %v297_v41 }
  0x1c   : > { %303 = vadd.xlane.f32.xlu0 %v302_v40 }
  0x1e   : > { %309 = vadd.xlane.f32.xlu1 %v308_v43 }
  0x2f   : > { %555 = vperm.xlu1 %1073, %v533_v44  }
  0x32   : > { %550 = vperm.xlu0 %1072, %v532_v46  }
  0x33   : > { %540 = vperm.xlu1 %1073, %v530_v47  }
  0x37   : > { %545 = vperm.xlu1 %1073, %v531_v48  }
  0xa5   : > { %v301_v49 = vpop.xlane.xlu0 %300 }
  0xa6   : > { %v311_v50 = vmax.f32 %v301_v49, 1e-24 }
  0xa7   : > { %v307_v51 = vpop.xlane.xlu1 %306 }
  0xa8   : > { %v313_v52 = vmax.f32 %v307_v51, 1e-24  ;;  %1074 = vrsqrt.f32 %v311_v50 }
  0xa9   : > { %v304_v53 = vpop.xlane.xlu0 %303 }
  0xaa   : > { %1076 = vrsqrt.f32 %v313_v52  ;;  %v312_v54 = vmax.f32 %v304_v53, 1e-24 }
  0xab   : > { %v310_v55 = vpop.xlane.xlu1 %309 }
  0xac   : > { %v314_v56 = vmax.f32 %v310_v55, 1e-24  ;;  %1078 = vrsqrt.f32 %v312_v54 }
  0xae   : > { %1080 = vrsqrt.f32 %v314_v56 }
  0xaf   : > { %v1277_v37 = vpop.permute.xlu1 %555 }
  0xb1   : > { %v551_v50 = vpop.permute.xlu0 %550 }
  0xb2   : > { %v1075_v57 = vpop.eup %1074 }
  0xb3   : > { %v320_v59 = vmul.f32 %v1075_v57, %v1175_v1  ;;  %v332_v60 = vmul.f32 %v1075_v57, %v1181_v3  ;;  %v319_v62 = vmul.f32 %v1075_v57, %v1173_v0  ;;  %v331_v63 = vmul.f32 %v1075_v57, %v1178_v2  ;;  %v541_v49 = vpop.permute.xlu1 %540 }
  0xb4   : > { %v1077_v58 = vpop.eup %1076 }
  0xb5   : > { %v324_v4 = vmul.f32 %v1077_v58, %v1191_v8  ;;  %v336_v5 = vmul.f32 %v1077_v58, %v1199_v11  ;;  %v323_v30 = vmul.f32 %v1077_v58, %v1189_v7  ;;  %v335_v33 = vmul.f32 %v1077_v58, %v1196_v10  ;;  %v536_v58 = vld [vmem:[%s1385_s3 + $0x10] sm:$0xff] }
  0xb6   : > { %v1079_v61 = vpop.eup %1078 }
  0xb7   : > { %v322_v9 = vmul.f32 %v1079_v61, %v1211_v18  ;;  %v334_v12 = vmul.f32 %v1079_v61, %v1217_v20  ;;  %v321_v13 = vmul.f32 %v1079_v61, %v1205_v14  ;;  %v333_v15 = vmul.f32 %v1079_v61, %v1214_v19 }
  0xb8   : > { %v1081_v6 = vpop.eup %1080 }
  0xb9   : > { %v326_v16 = vmul.f32 %v1081_v6, %v1229_v27  ;;  %v338_v17 = vmul.f32 %v1081_v6, %v1235_v31  ;;  %v328_v21 = vpack.c.bf16 %v322_v9, %v320_v59  ;;  %v340_v22 = vpack.c.bf16 %v334_v12, %v332_v60 }
  0xba   : > { %v327_v23 = vpack.c.bf16 %v321_v13, %v319_v62  ;;  %v339_v24 = vpack.c.bf16 %v333_v15, %v331_v63  ;;  %v325_v32 = vmul.f32 %v1081_v6, %v1227_v26  ;;  %v337_v34 = vmul.f32 %v1081_v6, %v1232_v28  ;;  %v537_v63 = vld [vmem:[%s1385_s3 + $0x18] sm:$0xff]  ;;  %v546_v13 = vpop.permute.xlu1 %545  ;;  %v534_v15 = vld [vmem:[%s1385_s3] sm:$0xff] }
  0xbb   : > { %v330_v25 = vpack.c.bf16 %v326_v16, %v324_v4  ;;  %v342_v29 = vpack.c.bf16 %v338_v17, %v336_v5  ;;  %343 = vmatprep.subr.bf16.mxu0 %v328_v21  ;;  %375 = vmatprep.mubr.bf16.mxu0 %v328_v21 }
  0xbc   : > { %392 = vmatprep.subr.bf16.mxu1 %v340_v22  ;;  %424 = vmatprep.mubr.bf16.mxu1 %v340_v22  ;;  %v329_v35 = vpack.c.bf16 %v325_v32, %v323_v30  ;;  %v341_v36 = vpack.c.bf16 %v337_v34, %v335_v33 }
  0xbd   : > { %344 = vmatpush1.bf16.xpose.msra.mxu0 %v327_v23  ;;  %393 = vmatpush1.bf16.xpose.msra.mxu1 %v339_v24 }
  0xbe   : > { %345 = vmatprep.subr.bf16.mxu0 %v330_v25  ;;  %394 = vmatprep.subr.bf16.mxu1 %v342_v29 }
  0xc5   : > { %346 = vmatpush1.bf16.xpose.msra.mxu0 %v329_v35  ;;  %395 = vmatpush1.bf16.xpose.msra.mxu1 %v341_v36 }
  0xc6   : > { %441 = vmatprep.subr.bf16.mxu0 %v340_v22 }
  0xcc   : > { %376 = vmatmul.mubr.bf16.vlgmr.msra.gmra.mrb[0].mxu0 %v327_v23  ;;  %425 = vmatmul.mubr.bf16.vlgmr.msra.gmra.mrb[0].mxu1 %v339_v24 }
  0xcd   : > { %383 = vmatprep.mubr.bf16.mxu0 %v330_v25  ;;  %432 = vmatprep.mubr.bf16.mxu1 %v342_v29 }
  0xce   : > { %442 = vmatpush1.bf16.xpose.msra.mxu0 %v339_v24 }
  0xcf   : > { %443 = vmatprep.subr.bf16.mxu0 %v342_v29  ;;  %v535_v29 = vld [vmem:[%s1385_s3 + $0x8] sm:$0xff] }
  0xd4   : > { %384 = vmatmul.mubr.bf16.gmra.mrb[4].mxu0 %v329_v35  ;;  %433 = vmatmul.mubr.bf16.gmra.mrb[4].mxu1 %v341_v36 }
  0xd5   : > { %473 = vmatprep.mubr.bf16.mxu0 %v328_v21  ;;  %723 = vmatprep.mubr.bf16.mxu1 %v1122_v45 }
  0xd6   : > { %444 = vmatpush1.bf16.xpose.msra.mxu0 %v341_v36 }
  0xdd   : > { %474 = vmatmul.mubr.bf16.vlgmr.msra.gmra.mrb[8].mxu0 %v327_v23 }
  0xde   : > { %481 = vmatprep.mubr.bf16.mxu0 %v330_v25 }
  0xe5   : > { %482 = vmatmul.mubr.bf16.gmra.mrb[12].mxu0 %v329_v35 }
  0xe6   : > { %713 = vmatprep.mubr.bf16.mxu0 %v1122_v45 }
 0x19f   : > { %v377_v38 = vpop.f32.mrb[0].mxu0  ;;  %v426_v39 = vpop.f32.mrb[0].mxu1 }
 0x1a0   : > { %v490_v40 = vsub.f32 %v377_v38, %v426_v39  ;;  %v379_v41 = vpop.f32.mrb[1].mxu0  ;;  %v428_v42 = vpop.f32.mrb[1].mxu1 }
 0x1a1   : > { %v380_v43 = vpop.f32.mrb[2].mxu0  ;;  %v429_v44 = vpop.f32.mrb[2].mxu1 }
 0x1a2   : > { %v491_v46 = vsub.f32 %v380_v43, %v429_v44  ;;  %v382_v47 = vpop.f32.mrb[3].mxu0  ;;  %v431_v48 = vpop.f32.mrb[3].mxu1  ;;  %v558_v6 = vmul.f32 %v541_v49, %v490_v40 }
 0x1a4   : > { %v559_v21 = vmul.f32 %v546_v13, %v491_v46  ;;  %v1291_v24 = vadd.f32 %v558_v6, %v534_v15 }
 0x1a6   : > { %v567_v30 = vsel %vm566_vm0, %v1291_v24, -inf  ;;  %v563_v32 = vadd.f32 %v559_v21, %v535_v29 }
 0x1a7   : > { %v385_v51 = vpop.f32.mrb[4].mxu0  ;;  %v434_v52 = vpop.f32.mrb[4].mxu1 }
 0x1a8   : > { %v492_v53 = vsub.f32 %v385_v51, %v434_v52  ;;  %v387_v54 = vpop.f32.mrb[5].mxu0  ;;  %v436_v55 = vpop.f32.mrb[5].mxu1  ;;  %v570_v36 = vsel %vm566_vm0, %v563_v32, -inf }
 0x1a9   : > { %v388_v56 = vpop.f32.mrb[6].mxu0  ;;  %v437_v57 = vpop.f32.mrb[6].mxu1 }
 0x1aa   : > { %v493_v59 = vsub.f32 %v388_v56, %v437_v57  ;;  %v560_v60 = vmul.f32 %v551_v50, %v492_v53  ;;  %v390_v61 = vpop.f32.mrb[7].mxu0  ;;  %v439_v62 = vpop.f32.mrb[7].mxu1 }
 0x1ac   : > { %v561_v4 = vmul.f32 %v1277_v37, %v493_v59  ;;  %v564_v5 = vadd.f32 %v560_v60, %v536_v58 }
 0x1ae   : > { %v573_v9 = vsel %vm566_vm0, %v564_v5, -inf  ;;  %v565_v12 = vadd.f32 %v561_v4, %v537_v63 }
 0x1af   : > { %574 = vmax.xlane.f32.xlu0 %v573_v9 }
 0x1b0   : > { %v475_v16 = vpop.f32.mrb[8].mxu0  ;;  %v576_v23 = vsel %vm566_vm0, %v565_v12, -inf }
 0x1b1   : > { %494 = vxpose.xlu1.b32.start [1/4] (short) (narrow) %v475_v16, 32  ;;  %v477_v17 = vpop.f32.mrb[9].mxu0 }
 0x1b2   : > { %v478_v22 = vpop.f32.mrb[10].mxu0 }
 0x1b3   : > { %v480_v25 = vpop.f32.mrb[11].mxu0  ;;  %577 = vmax.xlane.f32.xlu0 %v576_v23  ;;  %v668_v23 = vpack.c.bf16 %v1211_v18, %v1175_v1 }
 0x1b4   : > { %v667_v25 = vpack.c.bf16 %v1205_v14, %v1173_v0 }
 0x1b5   : > { %495 = vxpose.xlu1.b32.cont [2/4] (short) (narrow) %v478_v22, 32  ;;  %1050 = vmatprep.subr.bf16.mxu1 %v668_v23 }
 0x1b6   : > { %681 = vmatprep.subr.bf16.mxu0 %v668_v23  ;;  %1052 = vmatpush1.bf16.msra.mxu1 %v667_v25 }
 0x1b7   : > { %568 = vmax.xlane.f32.xlu0 %v567_v30  ;;  %682 = vmatpush1.bf16.msra.mxu0 %v667_v25  ;;  %v669_v30 = vpack.c.bf16 %v1227_v26, %v1189_v7 }
 0x1b8   : > { %v483_v33 = vpop.f32.mrb[12].mxu0 }
 0x1b9   : > { %496 = vxpose.xlu1.b32.cont [3/4] (short) (narrow) %v483_v33, 32  ;;  %v485_v34 = vpop.f32.mrb[13].mxu0 }
 0x1ba   : > { %v486_v35 = vpop.f32.mrb[14].mxu0 }
 0x1bb   : > { %v488_v38 = vpop.f32.mrb[15].mxu0  ;;  %571 = vmax.xlane.f32.xlu0 %v570_v36 }
 0x1bd   : > { %497 = vxpose.xlu1.b32.end [4/4] (short) (narrow) %v486_v35, 32 }
 0x231   : > { %v510_v39 = vpop.trf.xlu1 }
 0x232   : > { %v526_v40 = vadd.f32 %v510_v39, %v475_v16 }
 0x234   : > { %v611_v41 = vmul.f32 %v541_v49, %v526_v40 }
 0x235   : > { %v511_v42 = vpop.trf.xlu1 }
 0x236   : > { %v527_v43 = vadd.f32 %v511_v42, %v478_v22  ;;  %v615_v44 = vadd.f32 %v611_v41, %v534_v15 }
 0x238   : > { %v612_v46 = vmul.f32 %v546_v13, %v527_v43  ;;  %v619_v47 = vsel %vm566_vm0, %v615_v44, -inf }
 0x239   : > { %620 = vmax.xlane.f32.xlu1 %v619_v47  ;;  %v512_v48 = vpop.trf.xlu1 }
 0x23a   : > { %v528_v51 = vadd.f32 %v512_v48, %v483_v33  ;;  %v616_v52 = vadd.f32 %v612_v46, %v535_v29  ;;  %v670_v29 = vpack.c.bf16 %v1229_v27, %v1191_v8 }
 0x23c   : > { %v613_v53 = vmul.f32 %v551_v50, %v528_v51  ;;  %v622_v54 = vsel %vm566_vm0, %v616_v52, -inf  ;;  %v575_v55 = vpop.xlane.xlu0 %574  ;;  %1051 = vmatprep.subr.bf16.mxu1 %v670_v29  ;;  %683 = vmatprep.subr.bf16.mxu0 %v670_v29 }
 0x23d   : > { %v513_v56 = vpop.trf.xlu1  ;;  %623 = vmax.xlane.f32.xlu0 %v622_v54  ;;  %v581_v57 = vsub.f32 %v564_v5, %v575_v55  ;;  %1053 = vmatpush1.bf16.msra.mxu1 %v669_v30 }
 0x23e   : > { %v529_v59 = vadd.f32 %v513_v56, %v486_v35  ;;  %v617_v60 = vadd.f32 %v613_v53, %v536_v58  ;;  %684 = vmatpush1.bf16.msra.mxu0 %v669_v30  ;;  %809 = vmatprep.subr.bf16.mxu1 %v668_v23 }
 0x23f   : > { %v587_v49 = vmul.f32 1.442695, %v581_v57 }
 0x240   : > { %v614_v61 = vmul.f32 %v1277_v37, %v529_v59  ;;  %v625_v62 = vsel %vm566_vm0, %v617_v60, -inf  ;;  %v578_v4 = vpop.xlane.xlu0 %577  ;;  %v672_v59 = vpack.c.bf16 %v1217_v20, %v1181_v3 }
 0x241   : > { %1082 = vpow2.f32 %v587_v49  ;;  %626 = vmax.xlane.f32.xlu0 %v625_v62  ;;  %v582_v6 = vsub.f32 %v565_v12, %v578_v4 }
 0x242   : > { %v618_v9 = vadd.f32 %v614_v61, %v537_v63  ;;  %740 = vmatprep.subr.bf16.mxu0 %v672_v59 }
 0x243   : > { %v589_v13 = vmul.f32 1.442695, %v582_v6 }
 0x244   : > { %v628_v50 = vsel %vm566_vm0, %v618_v9, -inf  ;;  %v569_v15 = vpop.xlane.xlu0 %568 }
 0x245   : > { %1084 = vpow2.f32 %v589_v13  ;;  %629 = vmax.xlane.f32.xlu0 %v628_v50  ;;  %v579_v18 = vsub.f32 %v1291_v24, %v569_v15 }
 0x247   : > { %v583_v34 = vmul.f32 1.442695, %v579_v18 }
 0x248   : > { %v572_v16 = vpop.xlane.xlu0 %571 }
 0x249   : > { %v580_v5 = vsub.f32 %v563_v32, %v572_v16 }
 0x24b   : > { %v1304_v17 = vpop.eup %1082  ;;  %v585_v58 = vmul.f32 1.442695, %v580_v5  ;;  %v671_v5 = vpack.c.bf16 %v1214_v19, %v1178_v2 }
 0x24c   : > { %v597_v37 = vsel %vm566_vm0, %v1304_v17, 0.0 }
 0x24d   : > { %1086 = vpow2.f32 %v585_v58  ;;  %598 = vadd.xlane.f32.xlu0 %v597_v37  ;;  %v674_v37 = vpack.c.bf16 %v1235_v31, %v1199_v11 }
 0x24f   : > { %v1085_v21 = vpop.eup %1084 }
 0x250   : > { %v600_v12 = vsel %vm566_vm0, %v1085_v21, 0.0 }
 0x251   : > { %601 = vadd.xlane.f32.xlu0 %v600_v12 }
 0x257   : > { %v1309_v63 = vpop.eup %1086 }
 0x258   : > { %v594_v22 = vsel %vm566_vm0, %v1309_v63, 0.0 }
 0x259   : > { %595 = vadd.xlane.f32.xlu1 %v594_v22  ;;  %v673_v22 = vpack.c.bf16 %v1232_v28, %v1196_v10 }
 0x2c6   : > { %v621_v32 = vpop.xlane.xlu1 %620 }
 0x2c7   : > { %v631_v1 = vsub.f32 %v615_v44, %v621_v32 }
 0x2c9   : > { %v635_v0 = vmul.f32 1.442695, %v631_v1 }
 0x2ca   : > { %v624_v14 = vpop.xlane.xlu0 %623 }
 0x2cb   : > { %1088 = vpow2.f32 %v635_v0  ;;  %v632_v33 = vsub.f32 %v616_v52, %v624_v14 }
 0x2cd   : > { %v637_v35 = vmul.f32 1.442695, %v632_v33 }
 0x2ce   : > { %v627_v36 = vpop.xlane.xlu0 %626 }
 0x2cf   : > { %1090 = vpow2.f32 %v637_v35  ;;  %v633_v8 = vsub.f32 %v617_v60, %v627_v36 }
 0x2d0   : > { %1092 = vpow2.f32 %v583_v34 }
 0x2d1   : > { %v639_v7 = vmul.f32 1.442695, %v633_v8 }
 0x2d2   : > { %v630_v26 = vpop.xlane.xlu0 %629 }
 0x2d3   : > { %v634_v27 = vsub.f32 %v618_v9, %v630_v26  ;;  %1094 = vpow2.f32 %v639_v7 }
 0x2d5   : > { %v1089_v38 = vpop.eup %1088  ;;  %v641_v39 = vmul.f32 1.442695, %v634_v27 }
 0x2d6   : > { %v643_v40 = vsel %vm566_vm0, %v1089_v38, 0.0 }
 0x2d7   : > { %1096 = vpow2.f32 %v641_v39  ;;  %644 = vadd.xlane.f32.xlu0 %v643_v40 }
 0x2d9   : > { %v1091_v24 = vpop.eup %1090 }
 0x2da   : > { %v646_v41 = vsel %vm566_vm0, %v1091_v24, 0.0  ;;  %v599_v42 = vpop.xlane.xlu0 %598  ;;  %v1093_v43 = vpop.eup %1092 }
 0x2db   : > { %647 = vadd.xlane.f32.xlu0 %v646_v41  ;;  %1098 = vrcp.f32 %v599_v42  ;;  %v591_v44 = vsel %vm566_vm0, %v1093_v43, 0.0 }
 0x2dd   : > { %v1095_v47 = vpop.eup %1094 }
 0x2de   : > { %v602_v46 = vpop.xlane.xlu0 %601  ;;  %v649_v51 = vsel %vm566_vm0, %v1095_v47, 0.0 }
 0x2df   : > { %592 = vadd.xlane.f32.xlu0 %v591_v44  ;;  %1100 = vrcp.f32 %v602_v46 }
 0x2e1   : > { %v1097_v48 = vpop.eup %1096 }
 0x2e2   : > { %v652_v52 = vsel %vm566_vm0, %v1097_v48, 0.0 }
 0x2e3   : > { %650 = vadd.xlane.f32.xlu0 %v649_v51  ;;  %653 = vadd.xlane.f32.xlu1 %v652_v52 }
 0x2e5   : > { %v1099_v53 = vpop.eup %1098 }
 0x2e6   : > { %v609_v55 = vmul.f32 %v1099_v53, %v1304_v17  ;;  %v596_v49 = vpop.xlane.xlu1 %595 }
 0x2e9   : > { %v1101_v54 = vpop.eup %1100 }
 0x2ea   : > { %v610_v56 = vmul.f32 %v1101_v54, %v1085_v21 }
 0x2ec   : > { %v664_v57 = vpack.c.bf16 %v610_v56, %v609_v55 }
 0x2ee   : > { %1037 = vmatmul.mubr.msk.bf16.vlgmr.msra.gmra.mrb[8].mxu1 %vm566_vm0, %v664_v57 }
 0x2ef   : > { %810 = vmatpush1.bf16.msra.mxu1 %v667_v25  ;;  %841 = vmatprep.mubr.bf16.mxu1 %v1122_v45 }
 0x2f0   : > { %811 = vmatprep.subr.bf16.mxu1 %v670_v29 }
 0x2f3   : > { %812 = vmatpush1.bf16.msra.mxu1 %v669_v30 }
 0x2f4   : > { %862 = vmatprep.subr.bf16.mxu1 %v672_v59 }
 0x364   : > { %v645_v60 = vpop.xlane.xlu0 %644 }
 0x365   : > { %1102 = vrcp.f32 %v645_v60 }
 0x368   : > { %v648_v61 = vpop.xlane.xlu0 %647 }
 0x369   : > { %1104 = vrcp.f32 %v648_v61 }
 0x36a   : > { %1106 = vrcp.f32 %v596_v49 }
 0x36c   : > { %v593_v62 = vpop.xlane.xlu0 %592 }
 0x36d   : > { %1108 = vrcp.f32 %v593_v62 }
 0x36f   : > { %v1103_v9 = vpop.eup %1102 }
 0x370   : > { %v654_v4 = vpop.xlane.xlu1 %653  ;;  %v651_v6 = vpop.xlane.xlu0 %650  ;;  %v659_v50 = vmul.f32 %v1103_v9, %v1089_v38 }
 0x371   : > { %1110 = vrcp.f32 %v654_v4 }
 0x372   : > { %1112 = vrcp.f32 %v651_v6 }
 0x373   : > { %v1105_v13 = vpop.eup %1104 }
 0x374   : > { %v660_v15 = vmul.f32 %v1105_v13, %v1091_v24  ;;  %v1107_v16 = vpop.eup %1106 }
 0x375   : > { %v608_v17 = vmul.f32 %v1107_v16, %v1309_v63 }
 0x376   : > { %v665_v3 = vpack.c.bf16 %v660_v15, %v659_v50 }
 0x377   : > { %v1109_v20 = vpop.eup %1108 }
 0x378   : > { %v607_v58 = vmul.f32 %v1109_v20, %v1093_v43  ;;  %1040 = vmatmul.mubr.msk.bf16.vlgmr.msra.gmra.mrb[12].mxu1 %vm566_vm0, %v665_v3 }
 0x379   : > { %863 = vmatpush1.bf16.msra.mxu1 %v671_v5  ;;  %851 = vmatprep.mubr.bf16.mxu1 %v1122_v45 }
 0x37a   : > { %v663_v21 = vpack.c.bf16 %v608_v17, %v607_v58  ;;  %864 = vmatprep.subr.bf16.mxu1 %v674_v37 }
 0x37b   : > { %v1111_v12 = vpop.eup %1110 }
 0x37c   : > { %v1113_v23 = vpop.eup %1112  ;;  %1036 = vmatmul.mubr.msk.bf16.vlgmr.msra.gmra.mrb[16].mxu0 %vm566_vm0, %v663_v21  ;;  %v662_v2 = vmul.f32 %v1111_v12, %v1097_v48 }
 0x37d   : > { %741 = vmatpush1.bf16.msra.mxu0 %v671_v5  ;;  %v661_v19 = vmul.f32 %v1113_v23, %v1095_v47  ;;  %865 = vmatpush1.bf16.msra.mxu1 %v673_v22 }
 0x37e   : > { %742 = vmatprep.subr.bf16.mxu0 %v674_v37  ;;  %772 = vmatprep.mubr.bf16.mxu0 %v1122_v45 }
 0x37f   : > { %v666_v11 = vpack.c.bf16 %v662_v2, %v661_v19 }
 0x381   : > { %1041 = vmatmul.mubr.msk.bf16.gmra.mrb[16].mxu1 %vm566_vm0, %v666_v11  ;;  %743 = vmatpush1.bf16.msra.mxu0 %v673_v22 }
 0x382   : > { %894 = vmatprep.mubr.bf16.mxu1 %v1122_v45 }
 0x384   : > { %1038 = vmatmul.mubr.msk.bf16.vlgmr.msra.gmra.mrb[20].mxu0 %vm566_vm0, %v665_v3 }
 0x385   : > { %782 = vmatprep.mubr.bf16.mxu0 %v1122_v45 }
 0x389   : > { %1042 = vmatmul.mubr.msk.bf16.vlgmr.msra.gmra.mrb[12].mxu1 %vm566_vm0, %v663_v21 }
 0x38a   : > { %904 = vmatprep.mubr.bf16.mxu1 %v1122_v45 }
 0x38c   : > { %1039 = vmatmul.mubr.msk.bf16.gmra.mrb[24].mxu0 %vm566_vm0, %v666_v11 }
 0x391   : > { %1043 = vmatmul.mubr.msk.bf16.gmra.mrb[16].mxu1 %vm566_vm0, %v664_v57 }
 0x3c1   : > { %v725_v10 = vpop.f32.mrb[8].mxu1 }
 0x3c2   : > { %v727_v28 = vpop.f32.mrb[9].mxu1 }
 0x3c3   : > { %v729_v31 = vpop.f32.mrb[10].mxu1 }
 0x3c4   : > { %v731_v63 = vpop.f32.mrb[11].mxu1 }
 0x44f   : > { %v715_v25 = vpop.f32.mrb[16].mxu0 }
 0x450   : > { %v717_v29 = vpop.f32.mrb[17].mxu0 }
 0x451   : > { %v719_v30 = vpop.f32.mrb[18].mxu0 }
 0x452   : > { %v721_v32 = vpop.f32.mrb[19].mxu0 }
 0x457   : > { %v774_v45 = vpop.f32.mrb[20].mxu0 }
 0x458   : > { %v793_v1 = vsub.f32 %v715_v25, %v774_v45  ;;  %v776_v18 = vpop.f32.mrb[21].mxu0 }
 0x459   : > { %v794_v0 = vsub.f32 %v717_v29, %v776_v18  ;;  %v778_v14 = vpop.f32.mrb[22].mxu0 }
 0x45a   : > { %801 = vst [vmem:[%s1355_s22] sm:$0xff] %v793_v1  ;;  %v795_v33 = vsub.f32 %v719_v30, %v778_v14  ;;  %v780_v34 = vpop.f32.mrb[23].mxu0 }
 0x45b   : > { %802 = vst [vmem:[%s1355_s22 + $0x8] sm:$0xff] %v794_v0  ;;  %v796_v35 = vsub.f32 %v721_v32, %v780_v34 }
 0x45c   : > { %803 = vst [vmem:[%s1355_s22 + $0x10] sm:$0xff] %v795_v33  ;;  %v896_v36 = vpop.f32.mrb[12].mxu1 }
 0x45d   : > { %804 = vst [vmem:[%s1355_s22 + $0x18] sm:$0xff] %v796_v35  ;;  %915 = vst [vmem:[%s1362_s25] sm:$0xff] %v896_v36  ;;  %v898_v8 = vpop.f32.mrb[13].mxu1 }
 0x45e   : > { %916 = vst [vmem:[%s1362_s25 + $0x8] sm:$0xff] %v898_v8  ;;  %v900_v7 = vpop.f32.mrb[14].mxu1 }
 0x45f   : > { %917 = vst [vmem:[%s1362_s25 + $0x10] sm:$0xff] %v900_v7  ;;  %v902_v26 = vpop.f32.mrb[15].mxu1  ;;  %v784_v27 = vpop.f32.mrb[24].mxu0 }
 0x460   : > { %918 = vst [vmem:[%s1362_s25 + $0x18] sm:$0xff] %v902_v26  ;;  %v797_v38 = vsub.f32 %v725_v10, %v784_v27  ;;  %v786_v39 = vpop.f32.mrb[25].mxu0 }
 0x461   : > { %v798_v40 = vsub.f32 %v727_v28, %v786_v39  ;;  %v788_v24 = vpop.f32.mrb[26].mxu0 }
 0x462   : > { %805 = vst [vmem:[%s1355_s22 + $0x20] sm:$0xff] %v797_v38  ;;  %v799_v41 = vsub.f32 %v729_v31, %v788_v24  ;;  %v790_v42 = vpop.f32.mrb[27].mxu0 }
 0x463   : > { %806 = vst [vmem:[%s1355_s22 + $0x28] sm:$0xff] %v798_v40  ;;  %v800_v43 = vsub.f32 %v731_v63, %v790_v42 }
 0x464   : > { %807 = vst [vmem:[%s1355_s22 + $0x30] sm:$0xff] %v799_v41  ;;  %v906_v44 = vpop.f32.mrb[16].mxu1 }
 0x465   : > { %808 = vst [vmem:[%s1355_s22 + $0x38] sm:$0xff] %v800_v43  ;;  %919 = vst [vmem:[%s1362_s25 + $0x20] sm:$0xff] %v906_v44  ;;  %v908_v46 = vpop.f32.mrb[17].mxu1 }
 0x466   : > { %920 = vst [vmem:[%s1362_s25 + $0x28] sm:$0xff] %v908_v46  ;;  %v910_v47 = vpop.f32.mrb[18].mxu1 }
 0x467   : > { %921 = vst [vmem:[%s1362_s25 + $0x30] sm:$0xff] %v910_v47  ;;  %v912_v48 = vpop.f32.mrb[19].mxu1 }
 0x468   : > { %922 = vst [vmem:[%s1362_s25 + $0x38] sm:$0xff] %v912_v48 }
 0x469 PF: > { %s16_s18 = sadd.s32 1, %s1120_s18  }
 0x46a   : > { %p13_p4 = scmp.ge.s32.totalorder %s16_s18, 4  }
 0x46c   :  { %15 = sbr.rel (!%p13_p4) target bundleno = 1 (0x1), region = 81 }

// kernel: attention_f_forward.5
= control target key start
LH: loop header
LB: loop body
LE: loop exit
PB: predicated region body
PF: predicated region fallthrough
CT: control target
= control target key end

     0   :  { %s553_s15 = smov 0   ;;  %s555_s16 = smov 0   ;;  %s599_s0 = inlined_call_operand.vmem [shape: f32[2,32,256], index: 0, kind: input, shape index: {}]   ;;  %s600_s1 = inlined_call_operand.vmem [shape: f32[2,32], index: 1, kind: input, shape index: {}]   ;;  %s601_s2 = inlined_call_operand.vmem [shape: f32[2,1], index: 2, kind: input, shape index: {}]   ;;  %s602_s3 = inlined_call_operand.vmem [shape: f32[2,2,1], index: 3, kind: output, shape index: {0}]   ;;  %s603_s4 = inlined_call_operand.vmem [shape: f32[2,2,1], index: 4, kind: output, shape index: {1}]  }
   0x1   :  { %s557_s17 = smov 0  }
   0x2 LB: > { %s27_s18 = sadd.s32 1, %s520_s16  ;;  %p458_p0 = scmp.ge.s32.totalorder %s524_s17, 1  ;;  %s524_s17 = sphi %s557_s17, %s15_s17   ;;  %s520_s16 = sphi %s555_s16, %s605_s16   ;;  %s516_s15 = sphi %s553_s15, %s604_s15  }
   0x3   : > { %p29_p1 = scmp.ge.s32.totalorder %s27_s18, 2  ;;  %p184_p2 = scmp.lt.s32.totalorder %s524_s17, 3 }
   0x5   : > { %s607_s18 = smov (%p29_p1, %s27_s18), 0  ;;  %p185_p3 = pnand %p458_p0, %p184_p2 }
   0x6   : > { %p218_p4 = scmp.lt.s32.totalorder (!%p185_p3), %s516_s15, 1  ;;  %v526_v0 = vmov (!%p185_p3), 0.0   ;;  %v527_v1 = vmov (!%p185_p3), 0   ;;  %v244_v2 = vld [vmem:[%s601_s2] sm:$0x3] (!%p185_p3)  ;;  %vm250_vm0 = vcmask (!%p185_p3), 261120  }
   0x7   : > { %188 = sbr.rel (%p185_p3) target bundleno = 391 (0x187), region = 32  ;;  %318 = vmatprep.mubr.f32.mxu0 (!%p185_p3), %v526_v0  ;;  %501 = vset.pattern.permute.xlu0 (!%p185_p3), %v527_v1  ;;  %v235_v15 = vld [vmem:[%s600_s1] sm:$0x3] (!%p185_p3)  ;;  %vm325_vm1 = vcmask (!%p185_p3), 1041408   ;;  %vm342_vm2 = vcmask (!%p185_p3), 1024  }
   0x8   : > { %247 = vperm.xlu0 (!%p185_p3), %501, %v244_v2  }
   0xe   : > { %s609_s15 = smov (!%p218_p4, %s516_s15), 1 }
   0xf   : > { %s466_s21 = sshll.u32 %s609_s15, 6  ;;  %s461_s27 = sshll.u32 %s609_s15, 1 }
  0x10   : > { %s225_s24 = scalar_lea.vmem %s599_s0, %s466_s21  ;;  %s230_s30 = scalar_lea.vmem %s602_s3, %s461_s27 }
  0x11   : > { %v237_v3 = vld [vmem:[%s225_s24 + $0x8] sm:$0xff]  ;;  %v239_v4 = vld [vmem:[%s225_s24 + $0x18] sm:$0xff]  ;;  %v236_v5 = vld [vmem:[%s225_s24] sm:$0xff]  ;;  %s234_s7 = scalar_lea.vmem %s603_s4, %s461_s27 }
  0x12   : > { %v467_v6 = vpack.c.bf16 %v239_v4, %v237_v3  ;;  %v238_v7 = vld [vmem:[%s225_s24 + $0x10] sm:$0xff]  ;;  %v241_v8 = vld [vmem:[%s225_s24 + $0x28] sm:$0xff]  ;;  %v243_v9 = vld [vmem:[%s225_s24 + $0x38] sm:$0xff] }
  0x13   : > { %v469_v10 = vpack.c.bf16 %v238_v7, %v236_v5  ;;  %v471_v11 = vpack.c.bf16 %v243_v9, %v241_v8  ;;  %v240_v12 = vld [vmem:[%s225_s24 + $0x20] sm:$0xff]  ;;  %v242_v13 = vld [vmem:[%s225_s24 + $0x30] sm:$0xff] }
  0x14   : > { %468 = vmatprep.subr.bf16.mxu0 %v467_v6  ;;  %v473_v14 = vpack.c.bf16 %v242_v13, %v240_v12 }
  0x15   : > { %470 = vmatpush1.bf16.msra.mxu0 %v469_v10 }
  0x16   : > { %472 = vmatprep.subr.bf16.mxu0 %v471_v11 }
  0x19   : > { %474 = vmatpush1.bf16.msra.mxu0 %v473_v14 }
  0x1c   : > { %463 = vmatmul.mubr.msk.f32.vlgmr.msra.gmra.mrb[0].mxu0 %vm250_vm0, %v235_v15 }
  0x87   : > { %v248_v16 = vpop.permute.xlu0 %247 }
  0xef   : > { %v320_v17 = vpop.f32.mrb[0].mxu0 }
  0xf0   : > { %v321_v18 = vadd.f32 %v320_v17, %v248_v16  ;;  %v322_v19 = vpop.f32.mrb[1].mxu0 }
  0xf1   : > { %v323_v20 = vadd.f32 %v322_v19, %v248_v16 }
  0xf2   : > { %v331_v21 = vmul.f32 %v321_v18, %v321_v18  ;;  %v326_v22 = vsel %vm325_vm1, %v321_v18, 0.0 }
  0xf3   : > { %v332_v23 = vmul.f32 %v323_v20, %v323_v20  ;;  %v327_v24 = vsel %vm325_vm1, %v323_v20, 0.0 }
  0xf4   : > { %v328_v25 = vadd.f32 %v327_v24, %v326_v22  ;;  %v333_v26 = vsel %vm325_vm1, %v331_v21, 0.0 }
  0xf5   : > { %v334_v27 = vsel %vm325_vm1, %v332_v23, 0.0 }
  0xf6   : > { %329 = vadd.xlane.f32.xlu0 %v328_v25  ;;  %v335_v28 = vadd.f32 %v334_v27, %v333_v26 }
  0xf8   : > { %336 = vadd.xlane.f32.xlu1 %v335_v28 }
 0x183   : > { %v330_v29 = vpop.xlane.xlu0 %329 }
 0x184   : > { %343 = vst.msk [vmem:[%s230_s30] sm:$0x3] %vm342_vm2, %v330_v29 }
 0x185   : > { %v337_v30 = vpop.xlane.xlu1 %336 }
 0x186   : > { %344 = vst.msk [vmem:[%s234_s7] sm:$0x3] %vm342_vm2, %v337_v30 }
 0x187 PF: > { %s15_s17 = sadd.s32 1, %s524_s17   ;;  %s604_s15 = smov %s520_s16 }
 0x188   : > { %p12_p5 = scmp.ge.s32.totalorder %s15_s17, 4   ;;  %s605_s16 = smov %s607_s18 }
 0x18a   :  { %14 = sbr.rel (!%p12_p5) target bundleno = 2 (0x2), region = 82 }

// kernel: attention_f_forward.6
= control target key start
LH: loop header
LB: loop body
LE: loop exit
PB: predicated region body
PF: predicated region fallthrough
CT: control target
= control target key end

     0   :  { %s1175_s17 = smov 0   ;;  %s1177_s18 = smov 0   ;;  %s1329_s0 = inlined_call_operand.vmem [shape: f32[2,32,256], index: 0, kind: input, shape index: {}]   ;;  %s1330_s1 = inlined_call_operand.vmem [shape: f32[2,32,256], index: 1, kind: input, shape index: {}]   ;;  %s1331_s2 = inlined_call_operand.vmem [shape: f32[2,32], index: 2, kind: input, shape index: {}]   ;;  %s1332_s3 = inlined_call_operand.vmem [shape: f32[2,1], index: 3, kind: input, shape index: {}]   ;;  %s1333_s4 = inlined_call_operand.vmem [shape: f32[2,1], index: 4, kind: input, shape index: {}]   ;;  %s1334_s5 = inlined_call_operand.vmem [shape: f32[2,1], index: 5, kind: input, shape index: {}]   ;;  %s1335_s6 = inlined_call_operand.vmem [shape: f32[32,2], index: 6, kind: input, shape index: {}]   ;;  %s1336_s7 = inlined_call_operand.vmem [shape: f32[32,1], index: 7, kind: input, shape index: {}]   ;;  %s1337_s8 = inlined_call_operand.vmem [shape: f32[2,1], index: 8, kind: input, shape index: {}]   ;;  %s1338_s9 = inlined_call_operand.vmem [shape: f32[2,1], index: 9, kind: input, shape index: {}]   ;;  %s1339_s10 = inlined_call_operand.vmem [shape: f32[2,32,256], index: 10, kind: output, shape index: {0}]   ;;  %s1340_s11 = inlined_call_operand.vmem [shape: f32[2,32,256], index: 11, kind: output, shape index: {1}]  }
   0x1   :  { %s1179_s19 = smov 0  }
   0x2 LB: > { %s34_s20 = sadd.s32 1, %s1107_s18  ;;  %p989_p0 = scmp.ge.s32.totalorder %s1111_s19, 1  ;;  %s1111_s19 = sphi %s1179_s19, %s22_s19   ;;  %s1107_s18 = sphi %s1177_s18, %s1342_s18   ;;  %s1103_s17 = sphi %s1175_s17, %s1341_s17  }
   0x3   : > { %p36_p1 = scmp.ge.s32.totalorder %s34_s20, 2  ;;  %p380_p2 = scmp.lt.s32.totalorder %s1111_s19, 3 }
   0x5   : > { %s1344_s20 = smov (%p36_p1, %s34_s20), 0  ;;  %p381_p3 = pnand %p989_p0, %p380_p2 }
   0x6   : > { %p447_p4 = scmp.lt.s32.totalorder (!%p381_p3), %s1103_s17, 1  ;;  %v1113_v0 = vmov (!%p381_p3), 0.0   ;;  %v1114_v1 = vmov (!%p381_p3), 0   ;;  %v503_v2 = vld [vmem:[%s1332_s3] sm:$0x3] (!%p381_p3)  ;;  %vm509_vm0 = vcmask (!%p381_p3), 261120  }
   0x7   : > { %384 = sbr.rel (%p381_p3) target bundleno = 509 (0x1fd), region = 60  ;;  %577 = vmatprep.mubr.f32.mxu0 (!%p381_p3), %v1113_v0  ;;  %1053 = vset.pattern.permute.xlu0 (!%p381_p3), %v1114_v1  ;;  %v584_v3 = vld [vmem:[%s1337_s8] sm:$0x3] (!%p381_p3)  ;;  %v618_v28 = vld [vmem:[%s1336_s7 + $0x8] sm:$0xff] (!%p381_p3)  ;;  %v620_v30 = vld [vmem:[%s1336_s7 + $0x18] sm:$0xff] (!%p381_p3)  ;;  %vm654_vm1 = vcmask (!%p381_p3), 1041408  }
   0x8   : > { %v586_v4 = vld [vmem:[%s1338_s9] sm:$0x3] (!%p381_p3)  ;;  %506 = vperm.xlu0 (!%p381_p3), %1053, %v503_v2   ;;  %v585_v5 = vmul.f32 (!%p381_p3), 0.001953125, %v584_v3  ;;  %1054 = vset.pattern.permute.xlu1 (!%p381_p3), %v1114_v1  ;;  %v619_v32 = vld [vmem:[%s1336_s7 + $0x10] sm:$0xff] (!%p381_p3)  ;;  %vm641_vm2 = vcmask (!%p381_p3), 15360   ;;  %v614_v47 = vld [vmem:[%s1335_s6 + $0x8] sm:$0xff] (!%p381_p3) }
   0x9   : > { %v587_v6 = vmul.f32 (!%p381_p3), 0.001953125, %v586_v4  ;;  %725 = vmatprep.mubr.f32.mxu1 (!%p381_p3), %v1113_v0  ;;  %v502_v22 = vld [vmem:[%s1331_s2] sm:$0x3] (!%p381_p3)  ;;  %v615_v48 = vld [vmem:[%s1335_s6 + $0x10] sm:$0xff] (!%p381_p3)  ;;  %v616_v49 = vld [vmem:[%s1335_s6 + $0x18] sm:$0xff] (!%p381_p3) }
   0xa   : > { %v588_v7 = vmul.f32 (!%p381_p3), %v585_v5, %v585_v5  ;;  %v590_v23 = vld [vmem:[%s1333_s4] sm:$0x3] (!%p381_p3) }
   0xb   : > { %v594_v26 = vld [vmem:[%s1334_s5] sm:$0x3] (!%p381_p3) }
   0xc   : > { %v589_v11 = vsub.f32 (!%p381_p3), %v587_v6, %v588_v7  ;;  %v617_v31 = vld [vmem:[%s1336_s7] sm:$0xff] (!%p381_p3) }
   0xd   : > { %v613_v46 = vld [vmem:[%s1335_s6] sm:$0xff] (!%p381_p3) }
   0xe   : > { %s1346_s17 = smov (!%p447_p4, %s1103_s17), 1  ;;  %v591_v20 = vadd.f32 1e-05, %v589_v11 }
   0xf   : > { %s1204_s27 = sshll.u32 %s1346_s17, 6 }
  0x10   : > { %s454_s30 = scalar_lea.vmem %s1329_s0, %s1204_s27  ;;  %1055 = vrsqrt.f32 %v591_v20  ;;  %s1274_s24 = scalar_lea.vmem %s1330_s1, %s1204_s27 }
  0x11   : > { %v1210_v8 = vld [vmem:[%s454_s30 + $0x8] sm:$0xff]  ;;  %v1212_v9 = vld [vmem:[%s454_s30 + $0x18] sm:$0xff]  ;;  %v1214_v10 = vld [vmem:[%s454_s30] sm:$0xff]  ;;  %s1282_s28 = scalar_lea.vmem %s1339_s10, %s1204_s27  ;;  %s1288_s12 = scalar_lea.vmem %s1340_s11, %s1204_s27 }
  0x12   : > { %v1019_v12 = vpack.c.bf16 %v1212_v9, %v1210_v8  ;;  %v1218_v13 = vld [vmem:[%s454_s30 + $0x10] sm:$0xff]  ;;  %v1220_v14 = vld [vmem:[%s454_s30 + $0x28] sm:$0xff]  ;;  %v1222_v15 = vld [vmem:[%s454_s30 + $0x38] sm:$0xff] }
  0x13   : > { %v1021_v16 = vpack.c.bf16 %v1218_v13, %v1214_v10  ;;  %v1023_v17 = vpack.c.bf16 %v1222_v15, %v1220_v14  ;;  %v1228_v18 = vld [vmem:[%s454_s30 + $0x20] sm:$0xff]  ;;  %v1230_v19 = vld [vmem:[%s454_s30 + $0x30] sm:$0xff] }
  0x14   : > { %1020 = vmatprep.subr.bf16.mxu0 %v1019_v12  ;;  %v1025_v21 = vpack.c.bf16 %v1230_v19, %v1228_v18 }
  0x15   : > { %1022 = vmatpush1.bf16.msra.mxu0 %v1021_v16 }
  0x16   : > { %1024 = vmatprep.subr.bf16.mxu0 %v1023_v17 }
  0x19   : > { %1026 = vmatpush1.bf16.msra.mxu0 %v1025_v21 }
  0x1a   : > { %v1056_v24 = vpop.eup %1055 }
  0x1b   : > { %v593_v25 = vmul.f32 %v1056_v24, %v590_v23 }
  0x1c   : > { %998 = vmatmul.mubr.msk.f32.vlgmr.msra.gmra.mrb[0].mxu0 %vm509_vm0, %v502_v22 }
  0x1d   : > { %599 = vperm.xlu0 %1053, %v593_v25   ;;  %v595_v27 = vmul.f32 %v593_v25, %v585_v5 }
  0x1f   : > { %v596_v29 = vsub.f32 %v594_v26, %v595_v27 }
  0x21   : > { %628 = vperm.xlu0 %1053, %v618_v28   ;;  %606 = vperm.xlu1 %1054, %v596_v29  }
  0x25   : > { %638 = vperm.xlu0 %1053, %v620_v30   ;;  %623 = vperm.xlu1 %1054, %v617_v31  }
  0x29   : > { %633 = vperm.xlu1 %1054, %v619_v32  }
  0x87   : > { %v507_v33 = vpop.permute.xlu0 %506 }
  0x9c   : > { %v600_v37 = vpop.permute.xlu0 %599 }
  0xa0   : > { %v607_v40 = vpop.permute.xlu1 %606  ;;  %v629_v56 = vpop.permute.xlu0 %628 }
  0xa4   : > { %v624_v50 = vpop.permute.xlu1 %623  ;;  %v639_v6 = vpop.permute.xlu0 %638 }
  0xa8   : > { %v634_v63 = vpop.permute.xlu1 %633 }
  0xef   : > { %v579_v34 = vpop.f32.mrb[0].mxu0 }
  0xf0   : > { %v580_v35 = vadd.f32 %v579_v34, %v507_v33  ;;  %v581_v36 = vpop.f32.mrb[1].mxu0  ;;  %v494_v34 = vld [vmem:[%s1274_s24] sm:$0xff] }
  0xf1   : > { %v582_v38 = vadd.f32 %v581_v36, %v507_v33  ;;  %v495_v36 = vld [vmem:[%s1274_s24 + $0x8] sm:$0xff] }
  0xf2   : > { %v602_v39 = vmul.f32 %v600_v37, %v580_v35 }
  0xf3   : > { %v603_v41 = vmul.f32 %v600_v37, %v582_v38 }
  0xf4   : > { %v609_v42 = vadd.f32 %v607_v40, %v602_v39 }
  0xf5   : > { %v610_v43 = vadd.f32 %v607_v40, %v603_v41 }
  0xf6   : > { %v611_v45 = vmax.f32 %v609_v42, 0.0 }
  0xf7   : > { %v612_v44 = vmax.f32 %v610_v43, 0.0 }
  0xf9   : > { %999 = vmatprep.subr.msk.mxu1 %vm654_vm1, %v612_v44 }
  0xfa   : > { %1000 = vmatpush1.msk.msra.mxu1 %vm654_vm1, %v611_v45  ;;  %v496_v45 = vld [vmem:[%s1274_s24 + $0x10] sm:$0xff] }
  0xfb   : > { %1001 = vmatmul.mubr.msk.f32.vlgmr.msra.gmra.mrb[0].mxu1 %vm641_vm2, %v613_v46  ;;  %v497_v46 = vld [vmem:[%s1274_s24 + $0x18] sm:$0xff] }
  0xfc   : > { %731 = vmatprep.mubr.f32.mxu1 %v1113_v0 }
  0xff   : > { %1002 = vmatmul.mubr.msk.f32.gmra.mrb[2].mxu1 %vm641_vm2, %v614_v47 }
 0x100   : > { %737 = vmatprep.mubr.f32.mxu1 %v1113_v0 }
 0x103   : > { %1003 = vmatmul.mubr.msk.f32.gmra.mrb[4].mxu1 %vm641_vm2, %v615_v48 }
 0x104   : > { %743 = vmatprep.mubr.f32.mxu1 %v1113_v0 }
 0x107   : > { %1004 = vmatmul.mubr.msk.f32.gmra.mrb[6].mxu1 %vm641_vm2, %v616_v49 }
 0x1ce   : > { %v727_v51 = vpop.f32.mrb[0].mxu1 }
 0x1cf   : > { %v728_v52 = vadd.f32 %v727_v51, %v624_v50  ;;  %v729_v53 = vpop.f32.mrb[1].mxu1 }
 0x1d0   : > { %v730_v54 = vadd.f32 %v729_v53, %v624_v50  ;;  %v499_v53 = vld [vmem:[%s1274_s24 + $0x28] sm:$0xff] }
 0x1d1   : > { %v1005_v55 = vmul.f32 -1.442695, %v728_v52  ;;  %v498_v52 = vld [vmem:[%s1274_s24 + $0x20] sm:$0xff] }
 0x1d2   : > { %v1006_v57 = vmul.f32 -1.442695, %v730_v54  ;;  %v733_v58 = vpop.f32.mrb[2].mxu1 }
 0x1d3   : > { %1057 = vpow2.f32 %v1005_v55  ;;  %v734_v59 = vadd.f32 %v733_v58, %v629_v56  ;;  %v735_v60 = vpop.f32.mrb[3].mxu1  ;;  %v500_v58 = vld [vmem:[%s1274_s24 + $0x30] sm:$0xff] }
 0x1d4   : > { %1059 = vpow2.f32 %v1006_v57  ;;  %v736_v61 = vadd.f32 %v735_v60, %v629_v56 }
 0x1d5   : > { %v1007_v62 = vmul.f32 -1.442695, %v734_v59 }
 0x1d6   : > { %v1008_v0 = vmul.f32 -1.442695, %v736_v61  ;;  %v739_v1 = vpop.f32.mrb[4].mxu1 }
 0x1d7   : > { %1061 = vpow2.f32 %v1007_v62  ;;  %v740_v2 = vadd.f32 %v739_v1, %v634_v63  ;;  %v741_v3 = vpop.f32.mrb[5].mxu1  ;;  %v501_v62 = vld [vmem:[%s1274_s24 + $0x38] sm:$0xff] }
 0x1d8   : > { %1063 = vpow2.f32 %v1008_v0  ;;  %v742_v4 = vadd.f32 %v741_v3, %v634_v63 }
 0x1d9   : > { %v1009_v5 = vmul.f32 -1.442695, %v740_v2 }
 0x1da   : > { %v1010_v7 = vmul.f32 -1.442695, %v742_v4  ;;  %v745_v11 = vpop.f32.mrb[6].mxu1 }
 0x1db   : > { %1065 = vpow2.f32 %v1009_v5  ;;  %v746_v12 = vadd.f32 %v745_v11, %v639_v6  ;;  %v747_v16 = vpop.f32.mrb[7].mxu1 }
 0x1dc   : > { %1067 = vpow2.f32 %v1010_v7  ;;  %v748_v17 = vadd.f32 %v747_v16, %v639_v6 }
 0x1dd   : > { %v1058_v20 = vpop.eup %1057  ;;  %v1011_v21 = vmul.f32 -1.442695, %v746_v12 }
 0x1de   : > { %v1060_v22 = vpop.eup %1059  ;;  %v774_v23 = vadd.f32 1.0, %v1058_v20  ;;  %v1012_v24 = vmul.f32 -1.442695, %v748_v17 }
 0x1df   : > { %v775_v25 = vadd.f32 1.0, %v1060_v22  ;;  %1069 = vpow2.f32 %v1011_v21 }
 0x1e0   : > { %1071 = vrcp.f32 %v774_v23 }
 0x1e1   : > { %v1062_v26 = vpop.eup %1061  ;;  %1073 = vrcp.f32 %v775_v25 }
 0x1e2   : > { %v1064_v27 = vpop.eup %1063  ;;  %v776_v28 = vadd.f32 1.0, %v1062_v26  ;;  %1075 = vpow2.f32 %v1012_v24 }
 0x1e3   : > { %v777_v29 = vadd.f32 1.0, %v1064_v27 }
 0x1e4   : > { %1077 = vrcp.f32 %v776_v28 }
 0x1e5   : > { %v1066_v30 = vpop.eup %1065  ;;  %1079 = vrcp.f32 %v777_v29 }
 0x1e6   : > { %v1068_v31 = vpop.eup %1067  ;;  %v778_v32 = vadd.f32 1.0, %v1066_v30 }
 0x1e7   : > { %v779_v33 = vadd.f32 1.0, %v1068_v31 }
 0x1e8   : > { %1081 = vrcp.f32 %v778_v32 }
 0x1e9   : > { %v1070_v35 = vpop.eup %1069  ;;  %1083 = vrcp.f32 %v779_v33 }
 0x1ea   : > { %v1072_v37 = vpop.eup %1071  ;;  %v780_v38 = vadd.f32 1.0, %v1070_v35 }
 0x1eb   : > { %v1074_v39 = vpop.eup %1073  ;;  %v798_v40 = vmul.f32 %v1072_v37, %v1214_v10  ;;  %v814_v41 = vmul.f32 %v1072_v37, %v494_v34 }
 0x1ec   : > { %v1076_v42 = vpop.eup %1075  ;;  %v799_v43 = vmul.f32 %v1074_v39, %v1210_v8  ;;  %v815_v44 = vmul.f32 %v1074_v39, %v495_v36  ;;  %1085 = vrcp.f32 %v780_v38 }
 0x1ed   : > { %806 = vst [vmem:[%s1282_s28] sm:$0xff] %v798_v40  ;;  %822 = vst [vmem:[%s1288_s12] sm:$0xff] %v814_v41  ;;  %v781_v47 = vadd.f32 1.0, %v1076_v42 }
 0x1ee   : > { %v1078_v48 = vpop.eup %1077  ;;  %807 = vst [vmem:[%s1282_s28 + $0x8] sm:$0xff] %v799_v43  ;;  %823 = vst [vmem:[%s1288_s12 + $0x8] sm:$0xff] %v815_v44 }
 0x1ef   : > { %v1080_v10 = vpop.eup %1079  ;;  %v800_v49 = vmul.f32 %v1078_v48, %v1218_v13  ;;  %v816_v8 = vmul.f32 %v1078_v48, %v496_v45  ;;  %1087 = vrcp.f32 %v781_v47 }
 0x1f0   : > { %v801_v50 = vmul.f32 %v1080_v10, %v1212_v9  ;;  %v817_v51 = vmul.f32 %v1080_v10, %v497_v46 }
 0x1f1   : > { %808 = vst [vmem:[%s1282_s28 + $0x10] sm:$0xff] %v800_v49  ;;  %824 = vst [vmem:[%s1288_s12 + $0x10] sm:$0xff] %v816_v8 }
 0x1f2   : > { %v1082_v54 = vpop.eup %1081  ;;  %809 = vst [vmem:[%s1282_s28 + $0x18] sm:$0xff] %v801_v50  ;;  %825 = vst [vmem:[%s1288_s12 + $0x18] sm:$0xff] %v817_v51 }
 0x1f3   : > { %v1084_v13 = vpop.eup %1083  ;;  %v802_v55 = vmul.f32 %v1082_v54, %v1228_v18  ;;  %v818_v56 = vmul.f32 %v1082_v54, %v498_v52 }
 0x1f4   : > { %v803_v9 = vmul.f32 %v1084_v13, %v1220_v14  ;;  %v819_v57 = vmul.f32 %v1084_v13, %v499_v53 }
 0x1f5   : > { %810 = vst [vmem:[%s1282_s28 + $0x20] sm:$0xff] %v802_v55  ;;  %826 = vst [vmem:[%s1288_s12 + $0x20] sm:$0xff] %v818_v56 }
 0x1f6   : > { %v1086_v59 = vpop.eup %1085  ;;  %811 = vst [vmem:[%s1282_s28 + $0x28] sm:$0xff] %v803_v9  ;;  %827 = vst [vmem:[%s1288_s12 + $0x28] sm:$0xff] %v819_v57 }
 0x1f7   : > { %v804_v60 = vmul.f32 %v1086_v59, %v1230_v19  ;;  %v820_v61 = vmul.f32 %v1086_v59, %v500_v58 }
 0x1f9   : > { %v1088_v63 = vpop.eup %1087  ;;  %812 = vst [vmem:[%s1282_s28 + $0x30] sm:$0xff] %v804_v60  ;;  %828 = vst [vmem:[%s1288_s12 + $0x30] sm:$0xff] %v820_v61 }
 0x1fa   : > { %v805_v18 = vmul.f32 %v1088_v63, %v1222_v15  ;;  %v821_v0 = vmul.f32 %v1088_v63, %v501_v62 }
 0x1fc   : > { %813 = vst [vmem:[%s1282_s28 + $0x38] sm:$0xff] %v805_v18  ;;  %829 = vst [vmem:[%s1288_s12 + $0x38] sm:$0xff] %v821_v0 }
 0x1fd PF: > { %s22_s19 = sadd.s32 1, %s1111_s19   ;;  %s1341_s17 = smov %s1107_s18 }
 0x1fe   : > { %p19_p5 = scmp.ge.s32.totalorder %s22_s19, 4   ;;  %s1342_s18 = smov %s1344_s20 }
 0x200   :  { %21 = sbr.rel (!%p19_p5) target bundleno = 2 (0x2), region = 105 }

// kernel: attention_f_forward.7
= control target key start
LH: loop header
LB: loop body
LE: loop exit
PB: predicated region body
PF: predicated region fallthrough
CT: control target
= control target key end

     0   :  { %s804_s18 = smov 0   ;;  %s806_s19 = smov 0   ;;  %s907_s0 = inlined_call_operand.vmem [shape: f32[2,32,256], index: 0, kind: input, shape index: {}]   ;;  %s908_s1 = inlined_call_operand.vmem [shape: f32[2,32,256], index: 1, kind: input, shape index: {}]   ;;  %s909_s2 = inlined_call_operand.vmem [shape: f32[32,32], index: 2, kind: input, shape index: {}]   ;;  %s910_s3 = inlined_call_operand.vmem [shape: f32[32,32], index: 3, kind: input, shape index: {}]   ;;  %s911_s4 = inlined_call_operand.vmem [shape: f32[32,1], index: 4, kind: input, shape index: {}]   ;;  %s912_s5 = inlined_call_operand.vmem [shape: f32[2,32,256], index: 5, kind: output, shape index: {}]  }
   0x1   :  { %s808_s20 = smov 0  }
   0x2 LB: > { %s27_s21 = sadd.s32 1, %s766_s19  ;;  %p676_p0 = scmp.ge.s32.totalorder %s770_s20, 1  ;;  %s770_s20 = sphi %s808_s20, %s15_s20   ;;  %s766_s19 = sphi %s806_s19, %s914_s19   ;;  %s762_s18 = sphi %s804_s18, %s913_s18  }
   0x3   : > { %p29_p1 = scmp.ge.s32.totalorder %s27_s21, 2  ;;  %p225_p2 = scmp.lt.s32.totalorder %s770_s20, 3 }
   0x5   : > { %s916_s21 = smov (%p29_p1, %s27_s21), 0  ;;  %p226_p3 = pnand %p676_p0, %p225_p2 }
   0x6   : > { %p271_p4 = scmp.lt.s32.totalorder (!%p226_p3), %s762_s18, 1  ;;  %v772_v0 = vmov (!%p226_p3), 0.0   ;;  %v773_v1 = vmov (!%p226_p3), 0   ;;  %v527_v2 = vld [vmem:[%s911_s4] sm:$0xff] (!%p226_p3)  ;;  %v529_v3 = vld [vmem:[%s911_s4 + $0x10] sm:$0xff] (!%p226_p3)  ;;  %v528_v4 = vld [vmem:[%s911_s4 + $0x8] sm:$0xff] (!%p226_p3) }
   0x7   : > { %229 = sbr.rel (%p226_p3) target bundleno = 259 (0x103), region = 40  ;;  %401 = vmatprep.mubr.f32.mxu1 (!%p226_p3), %v772_v0  ;;  %502 = vmatprep.mubr.f32.mxu0 (!%p226_p3), %v772_v0  ;;  %v530_v5 = vld [vmem:[%s911_s4 + $0x18] sm:$0xff] (!%p226_p3)  ;;  %v312_v30 = vld [vmem:[%s910_s3] sm:$0xff] (!%p226_p3)  ;;  %vm324_vm0 = vcmask (!%p226_p3), 261120   ;;  %v313_v32 = vld [vmem:[%s910_s3 + $0x8] sm:$0xff] (!%p226_p3) }
   0x8   : > { %746 = vset.pattern.permute.xlu0 (!%p226_p3), %v773_v1  ;;  %747 = vset.pattern.permute.xlu1 (!%p226_p3), %v773_v1  ;;  %v300_v31 = vld [vmem:[%s909_s2] sm:$0xff] (!%p226_p3)  ;;  %v301_v33 = vld [vmem:[%s909_s2 + $0x8] sm:$0xff] (!%p226_p3)  ;;  %v314_v34 = vld [vmem:[%s910_s3 + $0x10] sm:$0xff] (!%p226_p3) }
   0x9   : > { %533 = vperm.xlu0 (!%p226_p3), %746, %v527_v2   ;;  %543 = vperm.xlu1 (!%p226_p3), %747, %v529_v3   ;;  %v302_v35 = vld [vmem:[%s909_s2 + $0x10] sm:$0xff] (!%p226_p3)  ;;  %v315_v36 = vld [vmem:[%s910_s3 + $0x18] sm:$0xff] (!%p226_p3) }
   0xa   : > { %v303_v37 = vld [vmem:[%s909_s2 + $0x18] sm:$0xff] (!%p226_p3) }
   0xd   : > { %538 = vperm.xlu0 (!%p226_p3), %746, %v528_v4   ;;  %548 = vperm.xlu1 (!%p226_p3), %747, %v530_v5  }
   0xe   : > { %s918_s18 = smov (!%p271_p4, %s762_s18), 1 }
   0xf   : > { %s830_s26 = sshll.u32 %s918_s18, 6 }
  0x10   : > { %s288_s6 = scalar_lea.vmem %s908_s1, %s830_s26  ;;  %s278_s9 = scalar_lea.vmem %s907_s0, %s830_s26 }
  0x11   : > { %v317_v6 = vld [vmem:[%s288_s6 + $0x8] sm:$0xff]  ;;  %v319_v7 = vld [vmem:[%s288_s6 + $0x18] sm:$0xff]  ;;  %v316_v11 = vld [vmem:[%s288_s6] sm:$0xff] }
  0x12   : > { %v305_v8 = vld [vmem:[%s278_s9 + $0x8] sm:$0xff]  ;;  %v696_v9 = vpack.c.bf16 %v319_v7, %v317_v6  ;;  %v307_v10 = vld [vmem:[%s278_s9 + $0x18] sm:$0xff]  ;;  %v318_v12 = vld [vmem:[%s288_s6 + $0x10] sm:$0xff] }
  0x13   : > { %v704_v13 = vpack.c.bf16 %v307_v10, %v305_v8  ;;  %v698_v14 = vpack.c.bf16 %v318_v12, %v316_v11  ;;  %v304_v15 = vld [vmem:[%s278_s9] sm:$0xff]  ;;  %v306_v16 = vld [vmem:[%s278_s9 + $0x10] sm:$0xff]  ;;  %v321_v17 = vld [vmem:[%s288_s6 + $0x28] sm:$0xff] }
  0x14   : > { %697 = vmatprep.subr.bf16.mxu1 %v696_v9  ;;  %v706_v18 = vpack.c.bf16 %v306_v16, %v304_v15  ;;  %v323_v19 = vld [vmem:[%s288_s6 + $0x38] sm:$0xff]  ;;  %v309_v20 = vld [vmem:[%s278_s9 + $0x28] sm:$0xff]  ;;  %v320_v24 = vld [vmem:[%s288_s6 + $0x20] sm:$0xff] }
  0x15   : > { %v311_v21 = vld [vmem:[%s278_s9 + $0x38] sm:$0xff]  ;;  %705 = vmatprep.subr.bf16.mxu0 %v704_v13  ;;  %699 = vmatpush1.bf16.msra.mxu1 %v698_v14  ;;  %v700_v22 = vpack.c.bf16 %v323_v19, %v321_v17  ;;  %v322_v25 = vld [vmem:[%s288_s6 + $0x30] sm:$0xff]  ;;  %v308_v26 = vld [vmem:[%s278_s9 + $0x20] sm:$0xff] }
  0x16   : > { %v708_v23 = vpack.c.bf16 %v311_v21, %v309_v20  ;;  %707 = vmatpush1.bf16.msra.mxu0 %v706_v18  ;;  %v702_v27 = vpack.c.bf16 %v322_v25, %v320_v24  ;;  %v310_v28 = vld [vmem:[%s278_s9 + $0x30] sm:$0xff]  ;;  %s888_s9 = scalar_lea.vmem %s912_s5, %s830_s26 }
  0x17   : > { %701 = vmatprep.subr.bf16.mxu1 %v700_v22  ;;  %v710_v29 = vpack.c.bf16 %v310_v28, %v308_v26 }
  0x18   : > { %709 = vmatprep.subr.bf16.mxu0 %v708_v23 }
  0x19   : > { %703 = vmatpush1.bf16.msra.mxu1 %v702_v27 }
  0x1a   : > { %711 = vmatpush1.bf16.msra.mxu0 %v710_v29 }
  0x1c   : > { %683 = vmatmul.mubr.msk.f32.vlgmr.msra.gmra.mrb[0].mxu1 %vm324_vm0, %v312_v30 }
  0x1d   : > { %687 = vmatmul.mubr.msk.f32.vlgmr.msra.gmra.mrb[0].mxu0 %vm324_vm0, %v300_v31  ;;  %407 = vmatprep.mubr.f32.mxu1 %v772_v0 }
  0x1e   : > { %508 = vmatprep.mubr.f32.mxu0 %v772_v0 }
  0x20   : > { %684 = vmatmul.mubr.msk.f32.gmra.mrb[2].mxu1 %vm324_vm0, %v313_v32 }
  0x21   : > { %688 = vmatmul.mubr.msk.f32.gmra.mrb[2].mxu0 %vm324_vm0, %v301_v33  ;;  %413 = vmatprep.mubr.f32.mxu1 %v772_v0 }
  0x22   : > { %514 = vmatprep.mubr.f32.mxu0 %v772_v0 }
  0x24   : > { %685 = vmatmul.mubr.msk.f32.gmra.mrb[4].mxu1 %vm324_vm0, %v314_v34 }
  0x25   : > { %689 = vmatmul.mubr.msk.f32.gmra.mrb[4].mxu0 %vm324_vm0, %v302_v35  ;;  %419 = vmatprep.mubr.f32.mxu1 %v772_v0 }
  0x26   : > { %520 = vmatprep.mubr.f32.mxu0 %v772_v0 }
  0x28   : > { %686 = vmatmul.mubr.msk.f32.gmra.mrb[6].mxu1 %vm324_vm0, %v315_v36 }
  0x29   : > { %690 = vmatmul.mubr.msk.f32.gmra.mrb[6].mxu0 %vm324_vm0, %v303_v37 }
  0x88   : > { %v534_v38 = vpop.permute.xlu0 %533  ;;  %v544_v55 = vpop.permute.xlu1 %543 }
  0x8c   : > { %v539_v47 = vpop.permute.xlu0 %538  ;;  %v549_v6 = vpop.permute.xlu1 %548 }
  0xef   : > { %v403_v39 = vpop.f32.mrb[0].mxu1 }
  0xf0   : > { %v504_v40 = vpop.f32.mrb[0].mxu0  ;;  %v405_v41 = vpop.f32.mrb[1].mxu1 }
  0xf1   : > { %v505_v42 = vadd.f32 %v504_v40, %v403_v39  ;;  %v506_v43 = vpop.f32.mrb[1].mxu0 }
  0xf2   : > { %v507_v44 = vadd.f32 %v506_v43, %v405_v41 }
  0xf3   : > { %v551_v45 = vadd.f32 %v534_v38, %v505_v42  ;;  %v409_v46 = vpop.f32.mrb[2].mxu1 }
  0xf4   : > { %v552_v48 = vadd.f32 %v534_v38, %v507_v44  ;;  %v510_v49 = vpop.f32.mrb[2].mxu0  ;;  %v411_v50 = vpop.f32.mrb[3].mxu1 }
  0xf5   : > { %559 = vst [vmem:[%s888_s9] sm:$0xff] %v551_v45  ;;  %v511_v51 = vadd.f32 %v510_v49, %v409_v46  ;;  %v512_v52 = vpop.f32.mrb[3].mxu0 }
  0xf6   : > { %560 = vst [vmem:[%s888_s9 + $0x8] sm:$0xff] %v552_v48  ;;  %v513_v53 = vadd.f32 %v512_v52, %v411_v50 }
  0xf7   : > { %v553_v54 = vadd.f32 %v539_v47, %v511_v51  ;;  %v415_v56 = vpop.f32.mrb[4].mxu1 }
  0xf8   : > { %v554_v57 = vadd.f32 %v539_v47, %v513_v53  ;;  %v516_v58 = vpop.f32.mrb[4].mxu0  ;;  %v417_v59 = vpop.f32.mrb[5].mxu1 }
  0xf9   : > { %561 = vst [vmem:[%s888_s9 + $0x10] sm:$0xff] %v553_v54  ;;  %v517_v60 = vadd.f32 %v516_v58, %v415_v56  ;;  %v518_v61 = vpop.f32.mrb[5].mxu0 }
  0xfa   : > { %562 = vst [vmem:[%s888_s9 + $0x18] sm:$0xff] %v554_v57  ;;  %v519_v62 = vadd.f32 %v518_v61, %v417_v59 }
  0xfb   : > { %v555_v63 = vadd.f32 %v544_v55, %v517_v60  ;;  %v421_v0 = vpop.f32.mrb[6].mxu1 }
  0xfc   : > { %v556_v1 = vadd.f32 %v544_v55, %v519_v62  ;;  %v522_v2 = vpop.f32.mrb[6].mxu0  ;;  %v423_v3 = vpop.f32.mrb[7].mxu1 }
  0xfd   : > { %563 = vst [vmem:[%s888_s9 + $0x20] sm:$0xff] %v555_v63  ;;  %v523_v4 = vadd.f32 %v522_v2, %v421_v0  ;;  %v524_v5 = vpop.f32.mrb[7].mxu0 }
  0xfe   : > { %564 = vst [vmem:[%s888_s9 + $0x28] sm:$0xff] %v556_v1  ;;  %v525_v7 = vadd.f32 %v524_v5, %v423_v3 }
  0xff   : > { %v557_v8 = vadd.f32 %v549_v6, %v523_v4 }
 0x100   : > { %v558_v9 = vadd.f32 %v549_v6, %v525_v7 }
 0x101   : > { %565 = vst [vmem:[%s888_s9 + $0x30] sm:$0xff] %v557_v8 }
 0x102   : > { %566 = vst [vmem:[%s888_s9 + $0x38] sm:$0xff] %v558_v9 }
 0x103 PF: > { %s15_s20 = sadd.s32 1, %s770_s20   ;;  %s913_s18 = smov %s766_s19 }
 0x104   : > { %p12_p5 = scmp.ge.s32.totalorder %s15_s20, 4   ;;  %s914_s19 = smov %s916_s21 }
 0x106   :  { %14 = sbr.rel (!%p12_p5) target bundleno = 2 (0x2), region = 73 }

</bundles_post_ra>
